<compile_context>
chip_gen: v6e
topology: v6e:2x2x1
jax: 0.10.0
libtpu: 0.0.40
codegen_flags: <defaults>
</compile_context>

<pallas_src>
import functools
import math

import numpy as np
import jax
import jax.numpy as jnp
from jax import lax
from jax.experimental import pallas as pl
from jax.experimental.pallas import tpu as pltpu


# ----------------------------------------------------------------------------
# position encoding (identical math to the PyTorch helper, including the row-0
# behaviour: sin/cos applied to the zeroed row too, so row 0 = [0,1,0,1,...])
# ----------------------------------------------------------------------------
def position_encoding(n_position, d_pos_vec):
    pos = np.arange(n_position, dtype=np.float64)[:, None]
    j = np.arange(d_pos_vec, dtype=np.float64)[None, :]
    angle = pos / np.power(10000.0, 2.0 * (j // 2) / d_pos_vec)
    angle[0, :] = 0.0
    enc = np.zeros((n_position, d_pos_vec), dtype=np.float64)
    enc[:, 0::2] = np.sin(angle[:, 0::2])
    enc[:, 1::2] = np.cos(angle[:, 1::2])
    return enc.astype(np.float32)


def _round_up(x, m):
    return ((x + m - 1) // m) * m


def _slab_offsets(E, H, D):
    """Static row offsets of the packed bf16 weight slab (each block 8-aligned)."""
    r_wi = 0
    r_wh = r_wi + _round_up(2 * E, 8)      # block-diag input weight  (2E, 8H)
    r_qkv = r_wh + _round_up(2 * H, 8)     # block-diag recur weight  (2H, 8H)
    r_dec = r_qkv + _round_up(D, 8)        # fused q|k|v weight       (D, 3D)
    r_end = r_dec + _round_up(D, 8)        # collapsed decoder weight (D, Cp)
    return r_wi, r_wh, r_qkv, r_dec, r_end


# ----------------------------------------------------------------------------
# fused kernel: BiLSTM + time-max-pool + pos-enc + one-head attention +
#               LayerNorm + (collapsed) 3-layer linear decoder
# ----------------------------------------------------------------------------
def blstm_attn_kernel(x2d_ref, lens_ref, wslab_ref, pslab_ref, out_ref, xp_ref,
                      *, T, Bp, E, H, D, Cp, n_valid, offs):
    r_wi, r_wh, r_qkv, r_dec, _ = offs
    G8 = 8 * H
    NEG_INF = jnp.float32(-jnp.inf)

    # packed bf16 weight slab (static, sublane-aligned slices)
    wi = wslab_ref[r_wi:r_wi + 2 * E, 0:G8]    # (2E, 8H) block-diag input proj
    wh = wslab_ref[r_wh:r_wh + 2 * H, 0:G8]    # (2H, 8H) block-diag recurrence
    bi = pslab_ref[0:1, 0:G8]                  # (1, 8H) fused (b_ih + b_hh)

    # ---- hoisted input projection: ONE lane-dense (T*Bp, 2E) x (2E, 8H=128)
    #      matmul.  Row block s holds fwd gates for time s (cols laid out as
    #      [i_f i_b | f_f f_b | o_f o_b | g_f g_b]) and bwd gates for time
    #      T-1-s, because x2d row block s is [x_s | x_{T-1-s}] and the weight
    #      is block-diagonal.  Biases folded in here.
    xp_ref[...] = (jnp.dot(x2d_ref[...], wi, preferred_element_type=jnp.float32)
                   + bi)

    lens = lens_ref[...]                       # (Bp, 1) int32; 0 for pad rows
    is_fwd = lax.broadcasted_iota(jnp.int32, (Bp, 2 * H), 1) < H  # lane mask

    h_cat = jnp.zeros((Bp, 2 * H), jnp.float32)          # [h_fwd | h_bwd]
    c_cat = jnp.zeros((Bp, 2 * H), jnp.float32)
    mx_cat = jnp.full((Bp, 2 * H), NEG_INF, jnp.float32)  # running time-max

    # Static unroll (T small, compile-time constant): carried state lives in
    # vregs; exactly one (Bp,2H)x(2H,8H) MXU op, one 6H-wide sigmoid and one
    # 2H-wide tanh per step.  Length masking reproduces pack_padded_sequence
    # semantics (fwd processes t=s, bwd processes t=T-1-s; invalid steps leave
    # state frozen and contribute nothing to the max).
    for s in range(T):
        g = (xp_ref[s * Bp:(s + 1) * Bp, :]               # (Bp, 8H) full vreg
             + jnp.dot(h_cat.astype(jnp.bfloat16), wh,
                       preferred_element_type=jnp.float32))
        sig = jax.nn.sigmoid(g[:, 0:6 * H])               # i, f, o (both dirs)
        i_cat = sig[:, 0:2 * H]
        f_cat = sig[:, 2 * H:4 * H]
        o_cat = sig[:, 4 * H:6 * H]
        g_cat = jnp.tanh(g[:, 6 * H:8 * H])               # g (both dirs)

        c_new = f_cat * c_cat + i_cat * g_cat
        h_new = o_cat * jnp.tanh(c_new)

        v_f = s < lens                                    # (Bp, 1) fwd valid
        v_b = (T - 1 - s) < lens                          # (Bp, 1) bwd valid
        valid = (is_fwd & v_f) | (jnp.logical_not(is_fwd) & v_b)  # (Bp, 2H)

        h_cat = jnp.where(valid, h_new, h_cat)
        c_cat = jnp.where(valid, c_new, c_cat)
        mx_cat = jnp.maximum(mx_cat, jnp.where(valid, h_new, NEG_INF))

    # pad_packed_sequence pads with 0 up to max(sent_len) and torch.max runs
    # over those steps too: rows shorter than the batch max see a zero enter
    # the max (floor = 0); rows at the max do not (floor = -inf).
    maxlen = jnp.maximum(jnp.max(lens, axis=0, keepdims=True), 1)   # (1, 1)
    floor = jnp.where(lens >= maxlen, NEG_INF, jnp.float32(0.0))    # (Bp, 1)
    emb = jnp.maximum(mx_cat, floor)                                # (Bp, D)

    # ---- positional-encoding add + one-head scaled dot-product attention ----
    pos = pslab_ref[8:8 + Bp, 0:D]
    x = emb + pos                           # residual and q/k/v source (Bp, D)
    xb = x.astype(jnp.bfloat16)

    wqkv = wslab_ref[r_qkv:r_qkv + D, :]    # (D, W) bf16, [q | k | v | 0-pad]
    qkv = jnp.dot(xb, wqkv, preferred_element_type=jnp.float32)     # (Bp, W)
    qkvb = qkv.astype(jnp.bfloat16)
    q = qkvb[:, 0:D]
    k = qkvb[:, D:2 * D]
    v = qkvb[:, 2 * D:3 * D]

    scores = lax.dot_general(q, k, (((1,), (1,)), ((), ())),
                             preferred_element_type=jnp.float32)
    scores = scores * (1.0 / math.sqrt(D))
    col = lax.broadcasted_iota(jnp.int32, (Bp, Bp), 1)
    # Only column masking matters: masked rows are discarded by the final slice.
    scores = jnp.where(col >= n_valid, -1e10, scores)

    m = jnp.max(scores, axis=-1, keepdims=True)
    p = jnp.exp(scores - m)
    attn = p * pl.reciprocal(jnp.sum(p, axis=-1, keepdims=True), approx=True)
    o = jnp.dot(attn.astype(jnp.bfloat16), v, preferred_element_type=jnp.float32)

    # residual + LayerNorm (reference class: unbiased std, divide by std+eps).
    # gamma/beta are folded into the collapsed decoder weight/bias host-side.
    y = o + x
    mean = jnp.mean(y, axis=-1, keepdims=True)
    cen = y - mean
    var = jnp.sum(cen * cen, axis=-1, keepdims=True) * (1.0 / (D - 1))
    z = cen * pl.reciprocal(jnp.sqrt(var) + 1e-6, approx=True)

    # ---- collapsed decoder: Linear(D,FC)->Linear(FC,FC)->Linear(FC,C) folded
    #      into one (D, Cp) matmul (Cp = class dim padded to 128 lanes so the
    #      final store is unmasked).
    wdec = wslab_ref[r_dec:r_dec + D, 0:Cp]
    bdec = pslab_ref[1:2, 0:Cp]
    out_ref[...] = (jnp.dot(z.astype(jnp.bfloat16), wdec,
                            preferred_element_type=jnp.float32) + bdec)


# ----------------------------------------------------------------------------
# parameter construction (deterministic, synthetic, PyTorch layout)
# ----------------------------------------------------------------------------
def init_params(key, E, H, D, S, FC, C):
    ks = jax.random.split(key, 20)

    def nrm(k, shape, scale=0.1):
        return (scale * jax.random.normal(k, shape)).astype(jnp.float32)

    return dict(
        # nn.LSTM (transposed torch layout; columns in torch gate order i,f,g,o)
        wi_f=nrm(ks[0], (E, 4 * H)),     # weight_ih_l0.T
        wi_b=nrm(ks[1], (E, 4 * H)),     # weight_ih_l0_reverse.T
        wh_f=nrm(ks[2], (H, 4 * H)),     # weight_hh_l0.T
        wh_b=nrm(ks[3], (H, 4 * H)),     # weight_hh_l0_reverse.T
        b_ih_f=nrm(ks[4], (4 * H,)), b_hh_f=nrm(ks[5], (4 * H,)),
        b_ih_b=nrm(ks[6], (4 * H,)), b_hh_b=nrm(ks[7], (4 * H,)),
        # OneHeadAttn projections
        wq=nrm(ks[8], (D, D)), wk=nrm(ks[9], (D, D)), wv=nrm(ks[10], (D, D)),
        # LayerNorm affine
        gamma=jnp.ones((1, D), jnp.float32), beta=jnp.zeros((1, D), jnp.float32),
        # decoder Linear stack (x @ w + b layout)
        w1=nrm(ks[11], (D, FC)), b1=nrm(ks[12], (1, FC)),
        w2=nrm(ks[13], (FC, FC)), b2=nrm(ks[14], (1, FC)),
        w3=nrm(ks[15], (FC, C)), b3=nrm(ks[16], (1, C)),
        # positional-encoding table (max_sent_len, d_model)
        pos=jnp.asarray(position_encoding(S, D)),
    )


# ----------------------------------------------------------------------------
# one-time host precompute: pack everything into 2 VMEM slabs (bf16 weights,
# f32 small params), fuse gates / directions, collapse the decoder.
# ----------------------------------------------------------------------------
def prepare_params(p, B, E, H, D, FC, C):
    Bp = _round_up(max(B, 1), 8)
    Cp = _round_up(C, 128)
    G8 = 8 * H
    W = _round_up(max(G8, 3 * D, Cp), 128)
    r_wi, r_wh, r_qkv, r_dec, r_end = _slab_offsets(E, H, D)

    def gates(w):   # (..., 4H) in torch gate order -> (i, f, g, o)
        return (w[..., 0:H], w[..., H:2 * H], w[..., 2 * H:3 * H],
                w[..., 3 * H:4 * H])

    # merged gate-column layout: [ i_f i_b | f_f f_b | o_f o_b | g_f g_b ]
    i_f, f_f, g_f, o_f = gates(p['wi_f'])
    i_b, f_b, g_b, o_b = gates(p['wi_b'])
    zE = jnp.zeros((E, H), jnp.float32)
    wi_bd = jnp.concatenate([
        jnp.concatenate([i_f, zE, f_f, zE, o_f, zE, g_f, zE], axis=1),
        jnp.concatenate([zE, i_b, zE, f_b, zE, o_b, zE, g_b], axis=1)], axis=0)

    hi_f, hf_f, hg_f, ho_f = gates(p['wh_f'])
    hi_b, hf_b, hg_b, ho_b = gates(p['wh_b'])
    zH = jnp.zeros((H, H), jnp.float32)
    wh_bd = jnp.concatenate([
        jnp.concatenate([hi_f, zH, hf_f, zH, ho_f, zH, hg_f, zH], axis=1),
        jnp.concatenate([zH, hi_b, zH, hf_b, zH, ho_b, zH, hg_b], axis=1)], axis=0)

    bt_f = (p['b_ih_f'] + p['b_hh_f']).reshape(1, 4 * H)
    bt_b = (p['b_ih_b'] + p['b_hh_b']).reshape(1, 4 * H)
    bif, bff, bgf, bof = gates(bt_f)
    bib, bfb, bgb, bob = gates(bt_b)
    bi_fused = jnp.concatenate([bif, bib, bff, bfb, bof, bob, bgf, bgb], axis=1)

    # fused q|k|v projection
    wqkv = jnp.concatenate([p['wq'], p['wk'], p['wv']], axis=1)        # (D, 3D)

    # collapsed decoder + folded LayerNorm affine:
    #   out = (gamma*z + beta) @ W0 + b0 = z @ (diag(gamma)@W0) + (beta@W0 + b0)
    W0 = p['w1'] @ p['w2'] @ p['w3']                                   # (D, C)
    b0 = (p['b1'] @ p['w2'] + p['b2']) @ p['w3'] + p['b3']             # (1, C)
    Wd = p['gamma'].reshape(D, 1) * W0
    bd = p['beta'].reshape(1, D) @ W0 + b0

    wslab = jnp.zeros((r_end, W), jnp.float32)
    wslab = wslab.at[r_wi:r_wi + 2 * E, 0:G8].set(wi_bd)
    wslab = wslab.at[r_wh:r_wh + 2 * H, 0:G8].set(wh_bd)
    wslab = wslab.at[r_qkv:r_qkv + D, 0:3 * D].set(wqkv)
    wslab = wslab.at[r_dec:r_dec + D, 0:C].set(Wd)
    wslab = wslab.astype(jnp.bfloat16)

    # f32 param slab: row 0 = fused LSTM bias, row 1 = collapsed decoder bias,
    # rows 8..8+Bp = positional-encoding rows 0..B-1 (rows >= B stay zero,
    # mirroring ConstantPad2d + padding_idx behaviour).
    pslab = jnp.zeros((8 + Bp, W), jnp.float32)
    pslab = pslab.at[0, 0:G8].set(bi_fused[0])
    pslab = pslab.at[1, 0:C].set(bd[0])
    pslab = pslab.at[8:8 + B, 0:D].set(p['pos'][:B])
    return wslab, pslab


# ----------------------------------------------------------------------------
# wrapper: full BLSTMAttnNet forward (single fused pallas_call, no grid)
# ----------------------------------------------------------------------------
@functools.partial(jax.jit, static_argnames=("H", "C"))
def blstm_attn_net_forward(sent, sent_len, wslab, pslab, *, H, C):
    T, B, E = sent.shape
    D = 2 * H
    Bp = _round_up(max(B, 1), 8)
    Cp = _round_up(C, 128)
    offs = _slab_offsets(E, H, D)

    lens = jnp.asarray(sent_len, jnp.int32).reshape(B)
    lens_p = jnp.zeros((Bp, 1), jnp.int32).at[:B, 0].set(lens)

    # batch-pad, and concat [x_t | x_{T-1-t}] along E so the block-diagonal
    # input weight yields fwd+bwd gates in the same row block; bf16 at the
    # MXU boundary (accumulation stays f32 inside the kernel).
    xf = jnp.zeros((T, Bp, E), jnp.float32).at[:, :B, :].set(
        sent.astype(jnp.float32))
    x2d = (jnp.concatenate([xf, xf[::-1]], axis=-1)
           .reshape(T * Bp, 2 * E).astype(jnp.bfloat16))

    kernel = functools.partial(blstm_attn_kernel, T=T, Bp=Bp, E=E, H=H, D=D,
                               Cp=Cp, n_valid=B, offs=offs)
    vmem = pl.BlockSpec(memory_space=pltpu.MemorySpace.VMEM)

    logits_pad = pl.pallas_call(
        kernel,
        out_shape=jax.ShapeDtypeStruct((Bp, Cp), jnp.float32),
        in_specs=[vmem] * 4,
        out_specs=vmem,
        scratch_shapes=[pltpu.VMEM((T * Bp, 8 * H), jnp.float32)],
    )(x2d, lens_p, wslab, pslab)

    # logit = logit[:len(sent_len)]  (and drop the lane padding of the classes)
    return logits_pad[:B, :C]


if __name__ == "__main__":
    key = jax.random.PRNGKey(0)
    kx, kp = jax.random.split(key)

    # small shapes: seq_len=8, batch(= num sentences)=5, embed=16, lstm_dim=16
    T, B, E = 8, 5, 16
    H, S, FC, C = 16, 26, 32, 6
    D = 2 * H

    sent = jax.random.normal(kx, (T, B, E), dtype=jnp.float32)
    sent_len = np.array([8, 6, 7, 5, 8], dtype=np.int32)   # per-sentence lengths

    params = init_params(kp, E, H, D, S, FC, C)
    wslab, pslab = prepare_params(params, B, E, H, D, FC, C)   # one-time packing

    logits = blstm_attn_net_forward(sent, sent_len, wslab, pslab, H=H, C=C)
    logits = jax.block_until_ready(logits)

    assert logits.shape == (B, C), logits.shape
    assert bool(jnp.all(jnp.isfinite(logits)))
    print("KERNEL_OK")
</pallas_src>

<mosaic_0001>
module attributes {stable_mosaic.version = 11 : i64} {
  func.func @blstm_attn_kernel(%arg0: memref<64x32xbf16, #tpu.memory_space<vmem>>, %arg1: memref<8x1xi32, #tpu.memory_space<vmem>>, %arg2: memref<128x128xbf16, #tpu.memory_space<vmem>>, %arg3: memref<16x128xf32, #tpu.memory_space<vmem>>, %arg4: memref<8x128xf32, #tpu.memory_space<vmem>>, %arg5: memref<64x128xf32, #tpu.memory_space<vmem>>) attributes {dimension_semantics = [], scalar_prefetch = 0 : i64, scratch_operands = 1 : i64, tpu.core_type = #tpu.core_type<tc>} {
    %c0 = arith.constant 0 : index
    %c0_0 = arith.constant 0 : index
    %0 = vector.load %arg2[%c0, %c0_0] : memref<128x128xbf16, #tpu.memory_space<vmem>>, vector<32x128xbf16>
    %c32 = arith.constant 32 : index
    %c0_1 = arith.constant 0 : index
    %1 = vector.load %arg2[%c32, %c0_1] : memref<128x128xbf16, #tpu.memory_space<vmem>>, vector<32x128xbf16>
    %c0_2 = arith.constant 0 : index
    %c0_3 = arith.constant 0 : index
    %2 = vector.load %arg3[%c0_2, %c0_3] : memref<16x128xf32, #tpu.memory_space<vmem>>, vector<1x128xf32>
    %c0_4 = arith.constant 0 : index
    %c0_5 = arith.constant 0 : index
    %3 = vector.load %arg0[%c0_4, %c0_5] : memref<64x32xbf16, #tpu.memory_space<vmem>>, vector<64x32xbf16>
    %cst = arith.constant dense<0.000000e+00> : vector<64x128xf32>
    %4 = tpu.matmul %3, %0, %cst {dimension_numbers = #tpu.dot_dimension_numbers<[1], [0], [0], [1], [0, 0, 1, 1], [], []>} : vector<64x32xbf16>, vector<32x128xbf16>, vector<64x128xf32> -> vector<64x128xf32>
    %5 = vector.broadcast %2 : vector<1x128xf32> to vector<64x128xf32>
    %6 = arith.addf %4, %5 : vector<64x128xf32>
    %c0_6 = arith.constant 0 : index
    %c0_7 = arith.constant 0 : index
    %7 = vector.load %arg5[%c0_6, %c0_7] : memref<64x128xf32, #tpu.memory_space<vmem>>, vector<64x128xf32>
    tpu.vector_store %arg5[%c0_6, %c0_7], %6 {strides = array<i32>} : memref<64x128xf32, #tpu.memory_space<vmem>>, vector<64x128xf32>,
    %c0_8 = arith.constant 0 : index
    %c0_9 = arith.constant 0 : index
    %8 = vector.load %arg1[%c0_8, %c0_9] : memref<8x1xi32, #tpu.memory_space<vmem>>, vector<8x1xi32>
    %9 = tpu.iota {dimensions = array<i32: 1>} : vector<8x32xi32>
    %c16_i32 = arith.constant 16 : i32
    %10 = vector.broadcast %c16_i32 : i32 to vector<8x32xi32>
    %11 = arith.cmpi slt, %9, %10 : vector<8x32xi32>
    %cst_10 = arith.constant 0.000000e+00 : f32
    %12 = vector.broadcast %cst_10 : f32 to vector<8x32xf32>
    %cst_11 = arith.constant 0.000000e+00 : f32
    %13 = vector.broadcast %cst_11 : f32 to vector<8x32xf32>
    %cst_12 = arith.constant 0xFF800000 : f32
    %14 = vector.broadcast %cst_12 : f32 to vector<8x32xf32>
    %c0_13 = arith.constant 0 : index
    %c0_14 = arith.constant 0 : index
    %15 = vector.load %arg5[%c0_13, %c0_14] : memref<64x128xf32, #tpu.memory_space<vmem>>, vector<8x128xf32>
    %16 = arith.truncf %12 : vector<8x32xf32> to vector<8x32xbf16>
    %cst_15 = arith.constant dense<0.000000e+00> : vector<8x128xf32>
    %17 = tpu.matmul %16, %1, %cst_15 {dimension_numbers = #tpu.dot_dimension_numbers<[1], [0], [0], [1], [0, 0, 1, 1], [], []>} : vector<8x32xbf16>, vector<32x128xbf16>, vector<8x128xf32> -> vector<8x128xf32>
    %18 = arith.addf %15, %17 : vector<8x128xf32>
    %19 = vector.extract_strided_slice %18 {offsets = [0, 0], sizes = [8, 96], strides = [1, 1]} : vector<8x128xf32> to vector<8x96xf32>
    %20 = arith.negf %19 : vector<8x96xf32>
    %21 = math.exp %20 : vector<8x96xf32>
    %cst_16 = arith.constant 1.000000e+00 : f32
    %22 = vector.broadcast %cst_16 : f32 to vector<8x96xf32>
    %23 = arith.addf %22, %21 : vector<8x96xf32>
    %24 = arith.divf %22, %23 : vector<8x96xf32>
    %25 = vector.extract_strided_slice %24 {offsets = [0, 0], sizes = [8, 32], strides = [1, 1]} : vector<8x96xf32> to vector<8x32xf32>
    %26 = vector.extract_strided_slice %24 {offsets = [0, 32], sizes = [8, 32], strides = [1, 1]} : vector<8x96xf32> to vector<8x32xf32>
    %27 = vector.extract_strided_slice %24 {offsets = [0, 64], sizes = [8, 32], strides = [1, 1]} : vector<8x96xf32> to vector<8x32xf32>
    %28 = vector.extract_strided_slice %18 {offsets = [0, 96], sizes = [8, 32], strides = [1, 1]} : vector<8x128xf32> to vector<8x32xf32>
    %29 = math.tanh %28 : vector<8x32xf32>
    %30 = arith.mulf %26, %13 : vector<8x32xf32>
    %31 = arith.mulf %25, %29 : vector<8x32xf32>
    %32 = arith.addf %30, %31 : vector<8x32xf32>
    %33 = math.tanh %32 : vector<8x32xf32>
    %34 = arith.mulf %27, %33 : vector<8x32xf32>
    %c0_i32 = arith.constant 0 : i32
    %35 = vector.broadcast %c0_i32 : i32 to vector<8x1xi32>
    %36 = arith.cmpi sgt, %8, %35 : vector<8x1xi32>
    %c7_i32 = arith.constant 7 : i32
    %37 = vector.broadcast %c7_i32 : i32 to vector<8x1xi32>
    %38 = arith.cmpi sgt, %8, %37 : vector<8x1xi32>
    %39 = vector.broadcast %36 : vector<8x1xi1> to vector<8x32xi1>
    %40 = arith.andi %11, %39 : vector<8x32xi1>
    %cst_17 = arith.constant dense<true> : vector<8x32xi1>
    %41 = arith.xori %11, %cst_17 : vector<8x32xi1>
    %42 = vector.broadcast %38 : vector<8x1xi1> to vector<8x32xi1>
    %43 = arith.andi %41, %42 : vector<8x32xi1>
    %44 = arith.ori %40, %43 : vector<8x32xi1>
    %45 = arith.select %44, %34, %12 : vector<8x32xi1>, vector<8x32xf32>
    %46 = arith.select %44, %32, %13 : vector<8x32xi1>, vector<8x32xf32>
    %cst_18 = arith.constant 0xFF800000 : f32
    %47 = vector.broadcast %cst_18 : f32 to vector<8x32xf32>
    %48 = arith.select %44, %34, %47 : vector<8x32xi1>, vector<8x32xf32>
    %49 = arith.maximumf %14, %48 : vector<8x32xf32>
    %c8 = arith.constant 8 : index
    %c0_19 = arith.constant 0 : index
    %50 = vector.load %arg5[%c8, %c0_19] : memref<64x128xf32, #tpu.memory_space<vmem>>, vector<8x128xf32>
    %51 = arith.truncf %45 : vector<8x32xf32> to vector<8x32xbf16>
    %cst_20 = arith.constant dense<0.000000e+00> : vector<8x128xf32>
    %52 = tpu.matmul %51, %1, %cst_20 {dimension_numbers = #tpu.dot_dimension_numbers<[1], [0], [0], [1], [0, 0, 1, 1], [], []>} : vector<8x32xbf16>, vector<32x128xbf16>, vector<8x128xf32> -> vector<8x128xf32>
    %53 = arith.addf %50, %52 : vector<8x128xf32>
    %54 = vector.extract_strided_slice %53 {offsets = [0, 0], sizes = [8, 96], strides = [1, 1]} : vector<8x128xf32> to vector<8x96xf32>
    %55 = arith.negf %54 : vector<8x96xf32>
    %56 = math.exp %55 : vector<8x96xf32>
    %cst_21 = arith.constant 1.000000e+00 : f32
    %57 = vector.broadcast %cst_21 : f32 to vector<8x96xf32>
    %58 = arith.addf %57, %56 : vector<8x96xf32>
    %59 = arith.divf %57, %58 : vector<8x96xf32>
    %60 = vector.extract_strided_slice %59 {offsets = [0, 0], sizes = [8, 32], strides = [1, 1]} : vector<8x96xf32> to vector<8x32xf32>
    %61 = vector.extract_strided_slice %59 {offsets = [0, 32], sizes = [8, 32], strides = [1, 1]} : vector<8x96xf32> to vector<8x32xf32>
    %62 = vector.extract_strided_slice %59 {offsets = [0, 64], sizes = [8, 32], strides = [1, 1]} : vector<8x96xf32> to vector<8x32xf32>
    %63 = vector.extract_strided_slice %53 {offsets = [0, 96], sizes = [8, 32], strides = [1, 1]} : vector<8x128xf32> to vector<8x32xf32>
    %64 = math.tanh %63 : vector<8x32xf32>
    %65 = arith.mulf %61, %46 : vector<8x32xf32>
    %66 = arith.mulf %60, %64 : vector<8x32xf32>
    %67 = arith.addf %65, %66 : vector<8x32xf32>
    %68 = math.tanh %67 : vector<8x32xf32>
    %69 = arith.mulf %62, %68 : vector<8x32xf32>
    %c1_i32 = arith.constant 1 : i32
    %70 = vector.broadcast %c1_i32 : i32 to vector<8x1xi32>
    %71 = arith.cmpi sgt, %8, %70 : vector<8x1xi32>
    %c6_i32 = arith.constant 6 : i32
    %72 = vector.broadcast %c6_i32 : i32 to vector<8x1xi32>
    %73 = arith.cmpi sgt, %8, %72 : vector<8x1xi32>
    %74 = vector.broadcast %71 : vector<8x1xi1> to vector<8x32xi1>
    %75 = arith.andi %11, %74 : vector<8x32xi1>
    %cst_22 = arith.constant dense<true> : vector<8x32xi1>
    %76 = arith.xori %11, %cst_22 : vector<8x32xi1>
    %77 = vector.broadcast %73 : vector<8x1xi1> to vector<8x32xi1>
    %78 = arith.andi %76, %77 : vector<8x32xi1>
    %79 = arith.ori %75, %78 : vector<8x32xi1>
    %80 = arith.select %79, %69, %45 : vector<8x32xi1>, vector<8x32xf32>
    %81 = arith.select %79, %67, %46 : vector<8x32xi1>, vector<8x32xf32>
    %cst_23 = arith.constant 0xFF800000 : f32
    %82 = vector.broadcast %cst_23 : f32 to vector<8x32xf32>
    %83 = arith.select %79, %69, %82 : vector<8x32xi1>, vector<8x32xf32>
    %84 = arith.maximumf %49, %83 : vector<8x32xf32>
    %c16 = arith.constant 16 : index
    %c0_24 = arith.constant 0 : index
    %85 = vector.load %arg5[%c16, %c0_24] : memref<64x128xf32, #tpu.memory_space<vmem>>, vector<8x128xf32>
    %86 = arith.truncf %80 : vector<8x32xf32> to vector<8x32xbf16>
    %cst_25 = arith.constant dense<0.000000e+00> : vector<8x128xf32>
    %87 = tpu.matmul %86, %1, %cst_25 {dimension_numbers = #tpu.dot_dimension_numbers<[1], [0], [0], [1], [0, 0, 1, 1], [], []>} : vector<8x32xbf16>, vector<32x128xbf16>, vector<8x128xf32> -> vector<8x128xf32>
    %88 = arith.addf %85, %87 : vector<8x128xf32>
    %89 = vector.extract_strided_slice %88 {offsets = [0, 0], sizes = [8, 96], strides = [1, 1]} : vector<8x128xf32> to vector<8x96xf32>
    %90 = arith.negf %89 : vector<8x96xf32>
    %91 = math.exp %90 : vector<8x96xf32>
    %cst_26 = arith.constant 1.000000e+00 : f32
    %92 = vector.broadcast %cst_26 : f32 to vector<8x96xf32>
    %93 = arith.addf %92, %91 : vector<8x96xf32>
    %94 = arith.divf %92, %93 : vector<8x96xf32>
    %95 = vector.extract_strided_slice %94 {offsets = [0, 0], sizes = [8, 32], strides = [1, 1]} : vector<8x96xf32> to vector<8x32xf32>
    %96 = vector.extract_strided_slice %94 {offsets = [0, 32], sizes = [8, 32], strides = [1, 1]} : vector<8x96xf32> to vector<8x32xf32>
    %97 = vector.extract_strided_slice %94 {offsets = [0, 64], sizes = [8, 32], strides = [1, 1]} : vector<8x96xf32> to vector<8x32xf32>
    %98 = vector.extract_strided_slice %88 {offsets = [0, 96], sizes = [8, 32], strides = [1, 1]} : vector<8x128xf32> to vector<8x32xf32>
    %99 = math.tanh %98 : vector<8x32xf32>
    %100 = arith.mulf %96, %81 : vector<8x32xf32>
    %101 = arith.mulf %95, %99 : vector<8x32xf32>
    %102 = arith.addf %100, %101 : vector<8x32xf32>
    %103 = math.tanh %102 : vector<8x32xf32>
    %104 = arith.mulf %97, %103 : vector<8x32xf32>
    %c2_i32 = arith.constant 2 : i32
    %105 = vector.broadcast %c2_i32 : i32 to vector<8x1xi32>
    %106 = arith.cmpi sgt, %8, %105 : vector<8x1xi32>
    %c5_i32 = arith.constant 5 : i32
    %107 = vector.broadcast %c5_i32 : i32 to vector<8x1xi32>
    %108 = arith.cmpi sgt, %8, %107 : vector<8x1xi32>
    %109 = vector.broadcast %106 : vector<8x1xi1> to vector<8x32xi1>
    %110 = arith.andi %11, %109 : vector<8x32xi1>
    %cst_27 = arith.constant dense<true> : vector<8x32xi1>
    %111 = arith.xori %11, %cst_27 : vector<8x32xi1>
    %112 = vector.broadcast %108 : vector<8x1xi1> to vector<8x32xi1>
    %113 = arith.andi %111, %112 : vector<8x32xi1>
    %114 = arith.ori %110, %113 : vector<8x32xi1>
    %115 = arith.select %114, %104, %80 : vector<8x32xi1>, vector<8x32xf32>
    %116 = arith.select %114, %102, %81 : vector<8x32xi1>, vector<8x32xf32>
    %cst_28 = arith.constant 0xFF800000 : f32
    %117 = vector.broadcast %cst_28 : f32 to vector<8x32xf32>
    %118 = arith.select %114, %104, %117 : vector<8x32xi1>, vector<8x32xf32>
    %119 = arith.maximumf %84, %118 : vector<8x32xf32>
    %c24 = arith.constant 24 : index
    %c0_29 = arith.constant 0 : index
    %120 = vector.load %arg5[%c24, %c0_29] : memref<64x128xf32, #tpu.memory_space<vmem>>, vector<8x128xf32>
    %121 = arith.truncf %115 : vector<8x32xf32> to vector<8x32xbf16>
    %cst_30 = arith.constant dense<0.000000e+00> : vector<8x128xf32>
    %122 = tpu.matmul %121, %1, %cst_30 {dimension_numbers = #tpu.dot_dimension_numbers<[1], [0], [0], [1], [0, 0, 1, 1], [], []>} : vector<8x32xbf16>, vector<32x128xbf16>, vector<8x128xf32> -> vector<8x128xf32>
    %123 = arith.addf %120, %122 : vector<8x128xf32>
    %124 = vector.extract_strided_slice %123 {offsets = [0, 0], sizes = [8, 96], strides = [1, 1]} : vector<8x128xf32> to vector<8x96xf32>
    %125 = arith.negf %124 : vector<8x96xf32>
    %126 = math.exp %125 : vector<8x96xf32>
    %cst_31 = arith.constant 1.000000e+00 : f32
    %127 = vector.broadcast %cst_31 : f32 to vector<8x96xf32>
    %128 = arith.addf %127, %126 : vector<8x96xf32>
    %129 = arith.divf %127, %128 : vector<8x96xf32>
    %130 = vector.extract_strided_slice %129 {offsets = [0, 0], sizes = [8, 32], strides = [1, 1]} : vector<8x96xf32> to vector<8x32xf32>
    %131 = vector.extract_strided_slice %129 {offsets = [0, 32], sizes = [8, 32], strides = [1, 1]} : vector<8x96xf32> to vector<8x32xf32>
    %132 = vector.extract_strided_slice %129 {offsets = [0, 64], sizes = [8, 32], strides = [1, 1]} : vector<8x96xf32> to vector<8x32xf32>
    %133 = vector.extract_strided_slice %123 {offsets = [0, 96], sizes = [8, 32], strides = [1, 1]} : vector<8x128xf32> to vector<8x32xf32>
    %134 = math.tanh %133 : vector<8x32xf32>
    %135 = arith.mulf %131, %116 : vector<8x32xf32>
    %136 = arith.mulf %130, %134 : vector<8x32xf32>
    %137 = arith.addf %135, %136 : vector<8x32xf32>
    %138 = math.tanh %137 : vector<8x32xf32>
    %139 = arith.mulf %132, %138 : vector<8x32xf32>
    %c3_i32 = arith.constant 3 : i32
    %140 = vector.broadcast %c3_i32 : i32 to vector<8x1xi32>
    %141 = arith.cmpi sgt, %8, %140 : vector<8x1xi32>
    %c4_i32 = arith.constant 4 : i32
    %142 = vector.broadcast %c4_i32 : i32 to vector<8x1xi32>
    %143 = arith.cmpi sgt, %8, %142 : vector<8x1xi32>
    %144 = vector.broadcast %141 : vector<8x1xi1> to vector<8x32xi1>
    %145 = arith.andi %11, %144 : vector<8x32xi1>
    %cst_32 = arith.constant dense<true> : vector<8x32xi1>
    %146 = arith.xori %11, %cst_32 : vector<8x32xi1>
    %147 = vector.broadcast %143 : vector<8x1xi1> to vector<8x32xi1>
    %148 = arith.andi %146, %147 : vector<8x32xi1>
    %149 = arith.ori %145, %148 : vector<8x32xi1>
    %150 = arith.select %149, %139, %115 : vector<8x32xi1>, vector<8x32xf32>
    %151 = arith.select %149, %137, %116 : vector<8x32xi1>, vector<8x32xf32>
    %cst_33 = arith.constant 0xFF800000 : f32
    %152 = vector.broadcast %cst_33 : f32 to vector<8x32xf32>
    %153 = arith.select %149, %139, %152 : vector<8x32xi1>, vector<8x32xf32>
    %154 = arith.maximumf %119, %153 : vector<8x32xf32>
    %c32_34 = arith.constant 32 : index
    %c0_35 = arith.constant 0 : index
    %155 = vector.load %arg5[%c32_34, %c0_35] : memref<64x128xf32, #tpu.memory_space<vmem>>, vector<8x128xf32>
    %156 = arith.truncf %150 : vector<8x32xf32> to vector<8x32xbf16>
    %cst_36 = arith.constant dense<0.000000e+00> : vector<8x128xf32>
    %157 = tpu.matmul %156, %1, %cst_36 {dimension_numbers = #tpu.dot_dimension_numbers<[1], [0], [0], [1], [0, 0, 1, 1], [], []>} : vector<8x32xbf16>, vector<32x128xbf16>, vector<8x128xf32> -> vector<8x128xf32>
    %158 = arith.addf %155, %157 : vector<8x128xf32>
    %159 = vector.extract_strided_slice %158 {offsets = [0, 0], sizes = [8, 96], strides = [1, 1]} : vector<8x128xf32> to vector<8x96xf32>
    %160 = arith.negf %159 : vector<8x96xf32>
    %161 = math.exp %160 : vector<8x96xf32>
    %cst_37 = arith.constant 1.000000e+00 : f32
    %162 = vector.broadcast %cst_37 : f32 to vector<8x96xf32>
    %163 = arith.addf %162, %161 : vector<8x96xf32>
    %164 = arith.divf %162, %163 : vector<8x96xf32>
    %165 = vector.extract_strided_slice %164 {offsets = [0, 0], sizes = [8, 32], strides = [1, 1]} : vector<8x96xf32> to vector<8x32xf32>
    %166 = vector.extract_strided_slice %164 {offsets = [0, 32], sizes = [8, 32], strides = [1, 1]} : vector<8x96xf32> to vector<8x32xf32>
    %167 = vector.extract_strided_slice %164 {offsets = [0, 64], sizes = [8, 32], strides = [1, 1]} : vector<8x96xf32> to vector<8x32xf32>
    %168 = vector.extract_strided_slice %158 {offsets = [0, 96], sizes = [8, 32], strides = [1, 1]} : vector<8x128xf32> to vector<8x32xf32>
    %169 = math.tanh %168 : vector<8x32xf32>
    %170 = arith.mulf %166, %151 : vector<8x32xf32>
    %171 = arith.mulf %165, %169 : vector<8x32xf32>
    %172 = arith.addf %170, %171 : vector<8x32xf32>
    %173 = math.tanh %172 : vector<8x32xf32>
    %174 = arith.mulf %167, %173 : vector<8x32xf32>
    %c4_i32_38 = arith.constant 4 : i32
    %175 = vector.broadcast %c4_i32_38 : i32 to vector<8x1xi32>
    %176 = arith.cmpi sgt, %8, %175 : vector<8x1xi32>
    %c3_i32_39 = arith.constant 3 : i32
    %177 = vector.broadcast %c3_i32_39 : i32 to vector<8x1xi32>
    %178 = arith.cmpi sgt, %8, %177 : vector<8x1xi32>
    %179 = vector.broadcast %176 : vector<8x1xi1> to vector<8x32xi1>
    %180 = arith.andi %11, %179 : vector<8x32xi1>
    %cst_40 = arith.constant dense<true> : vector<8x32xi1>
    %181 = arith.xori %11, %cst_40 : vector<8x32xi1>
    %182 = vector.broadcast %178 : vector<8x1xi1> to vector<8x32xi1>
    %183 = arith.andi %181, %182 : vector<8x32xi1>
    %184 = arith.ori %180, %183 : vector<8x32xi1>
    %185 = arith.select %184, %174, %150 : vector<8x32xi1>, vector<8x32xf32>
    %186 = arith.select %184, %172, %151 : vector<8x32xi1>, vector<8x32xf32>
    %cst_41 = arith.constant 0xFF800000 : f32
    %187 = vector.broadcast %cst_41 : f32 to vector<8x32xf32>
    %188 = arith.select %184, %174, %187 : vector<8x32xi1>, vector<8x32xf32>
    %189 = arith.maximumf %154, %188 : vector<8x32xf32>
    %c40 = arith.constant 40 : index
    %c0_42 = arith.constant 0 : index
    %190 = vector.load %arg5[%c40, %c0_42] : memref<64x128xf32, #tpu.memory_space<vmem>>, vector<8x128xf32>
    %191 = arith.truncf %185 : vector<8x32xf32> to vector<8x32xbf16>
    %cst_43 = arith.constant dense<0.000000e+00> : vector<8x128xf32>
    %192 = tpu.matmul %191, %1, %cst_43 {dimension_numbers = #tpu.dot_dimension_numbers<[1], [0], [0], [1], [0, 0, 1, 1], [], []>} : vector<8x32xbf16>, vector<32x128xbf16>, vector<8x128xf32> -> vector<8x128xf32>
    %193 = arith.addf %190, %192 : vector<8x128xf32>
    %194 = vector.extract_strided_slice %193 {offsets = [0, 0], sizes = [8, 96], strides = [1, 1]} : vector<8x128xf32> to vector<8x96xf32>
    %195 = arith.negf %194 : vector<8x96xf32>
    %196 = math.exp %195 : vector<8x96xf32>
    %cst_44 = arith.constant 1.000000e+00 : f32
    %197 = vector.broadcast %cst_44 : f32 to vector<8x96xf32>
    %198 = arith.addf %197, %196 : vector<8x96xf32>
    %199 = arith.divf %197, %198 : vector<8x96xf32>
    %200 = vector.extract_strided_slice %199 {offsets = [0, 0], sizes = [8, 32], strides = [1, 1]} : vector<8x96xf32> to vector<8x32xf32>
    %201 = vector.extract_strided_slice %199 {offsets = [0, 32], sizes = [8, 32], strides = [1, 1]} : vector<8x96xf32> to vector<8x32xf32>
    %202 = vector.extract_strided_slice %199 {offsets = [0, 64], sizes = [8, 32], strides = [1, 1]} : vector<8x96xf32> to vector<8x32xf32>
    %203 = vector.extract_strided_slice %193 {offsets = [0, 96], sizes = [8, 32], strides = [1, 1]} : vector<8x128xf32> to vector<8x32xf32>
    %204 = math.tanh %203 : vector<8x32xf32>
    %205 = arith.mulf %201, %186 : vector<8x32xf32>
    %206 = arith.mulf %200, %204 : vector<8x32xf32>
    %207 = arith.addf %205, %206 : vector<8x32xf32>
    %208 = math.tanh %207 : vector<8x32xf32>
    %209 = arith.mulf %202, %208 : vector<8x32xf32>
    %c5_i32_45 = arith.constant 5 : i32
    %210 = vector.broadcast %c5_i32_45 : i32 to vector<8x1xi32>
    %211 = arith.cmpi sgt, %8, %210 : vector<8x1xi32>
    %c2_i32_46 = arith.constant 2 : i32
    %212 = vector.broadcast %c2_i32_46 : i32 to vector<8x1xi32>
    %213 = arith.cmpi sgt, %8, %212 : vector<8x1xi32>
    %214 = vector.broadcast %211 : vector<8x1xi1> to vector<8x32xi1>
    %215 = arith.andi %11, %214 : vector<8x32xi1>
    %cst_47 = arith.constant dense<true> : vector<8x32xi1>
    %216 = arith.xori %11, %cst_47 : vector<8x32xi1>
    %217 = vector.broadcast %213 : vector<8x1xi1> to vector<8x32xi1>
    %218 = arith.andi %216, %217 : vector<8x32xi1>
    %219 = arith.ori %215, %218 : vector<8x32xi1>
    %220 = arith.select %219, %209, %185 : vector<8x32xi1>, vector<8x32xf32>
    %221 = arith.select %219, %207, %186 : vector<8x32xi1>, vector<8x32xf32>
    %cst_48 = arith.constant 0xFF800000 : f32
    %222 = vector.broadcast %cst_48 : f32 to vector<8x32xf32>
    %223 = arith.select %219, %209, %222 : vector<8x32xi1>, vector<8x32xf32>
    %224 = arith.maximumf %189, %223 : vector<8x32xf32>
    %c48 = arith.constant 48 : index
    %c0_49 = arith.constant 0 : index
    %225 = vector.load %arg5[%c48, %c0_49] : memref<64x128xf32, #tpu.memory_space<vmem>>, vector<8x128xf32>
    %226 = arith.truncf %220 : vector<8x32xf32> to vector<8x32xbf16>
    %cst_50 = arith.constant dense<0.000000e+00> : vector<8x128xf32>
    %227 = tpu.matmul %226, %1, %cst_50 {dimension_numbers = #tpu.dot_dimension_numbers<[1], [0], [0], [1], [0, 0, 1, 1], [], []>} : vector<8x32xbf16>, vector<32x128xbf16>, vector<8x128xf32> -> vector<8x128xf32>
    %228 = arith.addf %225, %227 : vector<8x128xf32>
    %229 = vector.extract_strided_slice %228 {offsets = [0, 0], sizes = [8, 96], strides = [1, 1]} : vector<8x128xf32> to vector<8x96xf32>
    %230 = arith.negf %229 : vector<8x96xf32>
    %231 = math.exp %230 : vector<8x96xf32>
    %cst_51 = arith.constant 1.000000e+00 : f32
    %232 = vector.broadcast %cst_51 : f32 to vector<8x96xf32>
    %233 = arith.addf %232, %231 : vector<8x96xf32>
    %234 = arith.divf %232, %233 : vector<8x96xf32>
    %235 = vector.extract_strided_slice %234 {offsets = [0, 0], sizes = [8, 32], strides = [1, 1]} : vector<8x96xf32> to vector<8x32xf32>
    %236 = vector.extract_strided_slice %234 {offsets = [0, 32], sizes = [8, 32], strides = [1, 1]} : vector<8x96xf32> to vector<8x32xf32>
    %237 = vector.extract_strided_slice %234 {offsets = [0, 64], sizes = [8, 32], strides = [1, 1]} : vector<8x96xf32> to vector<8x32xf32>
    %238 = vector.extract_strided_slice %228 {offsets = [0, 96], sizes = [8, 32], strides = [1, 1]} : vector<8x128xf32> to vector<8x32xf32>
    %239 = math.tanh %238 : vector<8x32xf32>
    %240 = arith.mulf %236, %221 : vector<8x32xf32>
    %241 = arith.mulf %235, %239 : vector<8x32xf32>
    %242 = arith.addf %240, %241 : vector<8x32xf32>
    %243 = math.tanh %242 : vector<8x32xf32>
    %244 = arith.mulf %237, %243 : vector<8x32xf32>
    %c6_i32_52 = arith.constant 6 : i32
    %245 = vector.broadcast %c6_i32_52 : i32 to vector<8x1xi32>
    %246 = arith.cmpi sgt, %8, %245 : vector<8x1xi32>
    %c1_i32_53 = arith.constant 1 : i32
    %247 = vector.broadcast %c1_i32_53 : i32 to vector<8x1xi32>
    %248 = arith.cmpi sgt, %8, %247 : vector<8x1xi32>
    %249 = vector.broadcast %246 : vector<8x1xi1> to vector<8x32xi1>
    %250 = arith.andi %11, %249 : vector<8x32xi1>
    %cst_54 = arith.constant dense<true> : vector<8x32xi1>
    %251 = arith.xori %11, %cst_54 : vector<8x32xi1>
    %252 = vector.broadcast %248 : vector<8x1xi1> to vector<8x32xi1>
    %253 = arith.andi %251, %252 : vector<8x32xi1>
    %254 = arith.ori %250, %253 : vector<8x32xi1>
    %255 = arith.select %254, %244, %220 : vector<8x32xi1>, vector<8x32xf32>
    %256 = arith.select %254, %242, %221 : vector<8x32xi1>, vector<8x32xf32>
    %cst_55 = arith.constant 0xFF800000 : f32
    %257 = vector.broadcast %cst_55 : f32 to vector<8x32xf32>
    %258 = arith.select %254, %244, %257 : vector<8x32xi1>, vector<8x32xf32>
    %259 = arith.maximumf %224, %258 : vector<8x32xf32>
    %c56 = arith.constant 56 : index
    %c0_56 = arith.constant 0 : index
    %260 = vector.load %arg5[%c56, %c0_56] : memref<64x128xf32, #tpu.memory_space<vmem>>, vector<8x128xf32>
    %261 = arith.truncf %255 : vector<8x32xf32> to vector<8x32xbf16>
    %cst_57 = arith.constant dense<0.000000e+00> : vector<8x128xf32>
    %262 = tpu.matmul %261, %1, %cst_57 {dimension_numbers = #tpu.dot_dimension_numbers<[1], [0], [0], [1], [0, 0, 1, 1], [], []>} : vector<8x32xbf16>, vector<32x128xbf16>, vector<8x128xf32> -> vector<8x128xf32>
    %263 = arith.addf %260, %262 : vector<8x128xf32>
    %264 = vector.extract_strided_slice %263 {offsets = [0, 0], sizes = [8, 96], strides = [1, 1]} : vector<8x128xf32> to vector<8x96xf32>
    %265 = arith.negf %264 : vector<8x96xf32>
    %266 = math.exp %265 : vector<8x96xf32>
    %cst_58 = arith.constant 1.000000e+00 : f32
    %267 = vector.broadcast %cst_58 : f32 to vector<8x96xf32>
    %268 = arith.addf %267, %266 : vector<8x96xf32>
    %269 = arith.divf %267, %268 : vector<8x96xf32>
    %270 = vector.extract_strided_slice %269 {offsets = [0, 0], sizes = [8, 32], strides = [1, 1]} : vector<8x96xf32> to vector<8x32xf32>
    %271 = vector.extract_strided_slice %269 {offsets = [0, 32], sizes = [8, 32], strides = [1, 1]} : vector<8x96xf32> to vector<8x32xf32>
    %272 = vector.extract_strided_slice %269 {offsets = [0, 64], sizes = [8, 32], strides = [1, 1]} : vector<8x96xf32> to vector<8x32xf32>
    %273 = vector.extract_strided_slice %263 {offsets = [0, 96], sizes = [8, 32], strides = [1, 1]} : vector<8x128xf32> to vector<8x32xf32>
    %274 = math.tanh %273 : vector<8x32xf32>
    %275 = arith.mulf %271, %256 : vector<8x32xf32>
    %276 = arith.mulf %270, %274 : vector<8x32xf32>
    %277 = arith.addf %275, %276 : vector<8x32xf32>
    %278 = math.tanh %277 : vector<8x32xf32>
    %279 = arith.mulf %272, %278 : vector<8x32xf32>
    %c7_i32_59 = arith.constant 7 : i32
    %280 = vector.broadcast %c7_i32_59 : i32 to vector<8x1xi32>
    %281 = arith.cmpi sgt, %8, %280 : vector<8x1xi32>
    %c0_i32_60 = arith.constant 0 : i32
    %282 = vector.broadcast %c0_i32_60 : i32 to vector<8x1xi32>
    %283 = arith.cmpi sgt, %8, %282 : vector<8x1xi32>
    %284 = vector.broadcast %281 : vector<8x1xi1> to vector<8x32xi1>
    %285 = arith.andi %11, %284 : vector<8x32xi1>
    %cst_61 = arith.constant dense<true> : vector<8x32xi1>
    %286 = arith.xori %11, %cst_61 : vector<8x32xi1>
    %287 = vector.broadcast %283 : vector<8x1xi1> to vector<8x32xi1>
    %288 = arith.andi %286, %287 : vector<8x32xi1>
    %289 = arith.ori %285, %288 : vector<8x32xi1>
    %cst_62 = arith.constant 0xFF800000 : f32
    %290 = vector.broadcast %cst_62 : f32 to vector<8x32xf32>
    %291 = arith.select %289, %279, %290 : vector<8x32xi1>, vector<8x32xf32>
    %292 = arith.maximumf %259, %291 : vector<8x32xf32>
    %cst_63 = arith.constant dense<-2147483648> : vector<1xi32>
    %293 = vector.multi_reduction <maxsi>, %8, %cst_63 [0] : vector<8x1xi32> to vector<1xi32>
    %294 = vector.shape_cast %293 : vector<1xi32> to vector<1x1xi32>
    %c1_i32_64 = arith.constant 1 : i32
    %295 = vector.broadcast %c1_i32_64 : i32 to vector<1x1xi32>
    %296 = arith.maxsi %294, %295 : vector<1x1xi32>
    %297 = vector.broadcast %296 : vector<1x1xi32> to vector<8x1xi32>
    %298 = arith.cmpi sge, %8, %297 : vector<8x1xi32>
    %cst_65 = arith.constant 0xFF800000 : f32
    %cst_66 = arith.constant 0.000000e+00 : f32
    %299 = vector.broadcast %cst_65 : f32 to vector<8x1xf32>
    %300 = vector.broadcast %cst_66 : f32 to vector<8x1xf32>
    %301 = arith.select %298, %299, %300 : vector<8x1xi1>, vector<8x1xf32>
    %302 = vector.broadcast %301 : vector<8x1xf32> to vector<8x32xf32>
    %303 = arith.maximumf %292, %302 : vector<8x32xf32>
    %c8_67 = arith.constant 8 : index
    %c0_68 = arith.constant 0 : index
    %304 = vector.load %arg3[%c8_67, %c0_68] : memref<16x128xf32, #tpu.memory_space<vmem>>, vector<8x32xf32>
    %305 = arith.addf %303, %304 : vector<8x32xf32>
    %306 = arith.truncf %305 : vector<8x32xf32> to vector<8x32xbf16>
    %c64 = arith.constant 64 : index
    %c0_69 = arith.constant 0 : index
    %307 = vector.load %arg2[%c64, %c0_69] : memref<128x128xbf16, #tpu.memory_space<vmem>>, vector<32x128xbf16>
    %cst_70 = arith.constant dense<0.000000e+00> : vector<8x128xf32>
    %308 = tpu.matmul %306, %307, %cst_70 {dimension_numbers = #tpu.dot_dimension_numbers<[1], [0], [0], [1], [0, 0, 1, 1], [], []>} : vector<8x32xbf16>, vector<32x128xbf16>, vector<8x128xf32> -> vector<8x128xf32>
    %309 = arith.truncf %308 : vector<8x128xf32> to vector<8x128xbf16>
    %310 = vector.extract_strided_slice %309 {offsets = [0, 0], sizes = [8, 32], strides = [1, 1]} : vector<8x128xbf16> to vector<8x32xbf16>
    %311 = vector.extract_strided_slice %309 {offsets = [0, 32], sizes = [8, 32], strides = [1, 1]} : vector<8x128xbf16> to vector<8x32xbf16>
    %312 = vector.extract_strided_slice %309 {offsets = [0, 64], sizes = [8, 32], strides = [1, 1]} : vector<8x128xbf16> to vector<8x32xbf16>
    %cst_71 = arith.constant dense<0.000000e+00> : vector<8x8xf32>
    %313 = tpu.matmul %310, %311, %cst_71 {dimension_numbers = #tpu.dot_dimension_numbers<[1], [1], [0], [0], [0, 0, 1, 0], [], []>} : vector<8x32xbf16>, vector<8x32xbf16>, vector<8x8xf32> -> vector<8x8xf32>
    %cst_72 = arith.constant 0.176776692 : f32
    %314 = vector.broadcast %cst_72 : f32 to vector<8x8xf32>
    %315 = arith.mulf %313, %314 : vector<8x8xf32>
    %316 = tpu.iota {dimensions = array<i32: 1>} : vector<8x8xi32>
    %c5_i32_73 = arith.constant 5 : i32
    %317 = vector.broadcast %c5_i32_73 : i32 to vector<8x8xi32>
    %318 = arith.cmpi sge, %316, %317 : vector<8x8xi32>
    %cst_74 = arith.constant -1.000000e+10 : f32
    %319 = vector.broadcast %cst_74 : f32 to vector<8x8xf32>
    %320 = arith.select %318, %319, %315 : vector<8x8xi1>, vector<8x8xf32>
    %cst_75 = arith.constant dense<0xFF800000> : vector<8xf32>
    %321 = vector.multi_reduction <maximumf>, %320, %cst_75 [1] : vector<8x8xf32> to vector<8xf32>
    %322 = vector.shape_cast %321 : vector<8xf32> to vector<8x1xf32>
    %323 = vector.broadcast %322 : vector<8x1xf32> to vector<8x8xf32>
    %324 = arith.subf %320, %323 : vector<8x8xf32>
    %325 = math.exp %324 : vector<8x8xf32>
    %cst_76 = arith.constant dense<0.000000e+00> : vector<8xf32>
    %326 = vector.multi_reduction <add>, %325, %cst_76 [1] : vector<8x8xf32> to vector<8xf32>
    %327 = vector.shape_cast %326 : vector<8xf32> to vector<8x1xf32>
    %328 = tpu.reciprocal %327 {approx = true} : vector<8x1xf32> -> vector<8x1xf32>
    %329 = vector.broadcast %328 : vector<8x1xf32> to vector<8x8xf32>
    %330 = arith.mulf %325, %329 : vector<8x8xf32>
    %331 = arith.truncf %330 : vector<8x8xf32> to vector<8x8xbf16>
    %cst_77 = arith.constant dense<0.000000e+00> : vector<8x32xf32>
    %332 = tpu.matmul %331, %312, %cst_77 {dimension_numbers = #tpu.dot_dimension_numbers<[1], [0], [0], [1], [0, 0, 1, 1], [], []>} : vector<8x8xbf16>, vector<8x32xbf16>, vector<8x32xf32> -> vector<8x32xf32>
    %333 = arith.addf %332, %305 : vector<8x32xf32>
    %cst_78 = arith.constant dense<0.000000e+00> : vector<8xf32>
    %334 = vector.multi_reduction <add>, %333, %cst_78 [1] : vector<8x32xf32> to vector<8xf32>
    %335 = vector.shape_cast %334 : vector<8xf32> to vector<8x1xf32>
    %cst_79 = arith.constant 3.200000e+01 : f32
    %336 = vector.broadcast %cst_79 : f32 to vector<8x1xf32>
    %337 = arith.divf %335, %336 : vector<8x1xf32>
    %338 = vector.broadcast %337 : vector<8x1xf32> to vector<8x32xf32>
    %339 = arith.subf %333, %338 : vector<8x32xf32>
    %340 = arith.mulf %339, %339 : vector<8x32xf32>
    %cst_80 = arith.constant dense<0.000000e+00> : vector<8xf32>
    %341 = vector.multi_reduction <add>, %340, %cst_80 [1] : vector<8x32xf32> to vector<8xf32>
    %342 = vector.shape_cast %341 : vector<8xf32> to vector<8x1xf32>
    %cst_81 = arith.constant 0.0322580636 : f32
    %343 = vector.broadcast %cst_81 : f32 to vector<8x1xf32>
    %344 = arith.mulf %342, %343 : vector<8x1xf32>
    %345 = math.sqrt %344 : vector<8x1xf32>
    %cst_82 = arith.constant 9.99999997E-7 : f32
    %346 = vector.broadcast %cst_82 : f32 to vector<8x1xf32>
    %347 = arith.addf %345, %346 : vector<8x1xf32>
    %348 = tpu.reciprocal %347 {approx = true} : vector<8x1xf32> -> vector<8x1xf32>
    %349 = vector.broadcast %348 : vector<8x1xf32> to vector<8x32xf32>
    %350 = arith.mulf %339, %349 : vector<8x32xf32>
    %c96 = arith.constant 96 : index
    %c0_83 = arith.constant 0 : index
    %351 = vector.load %arg2[%c96, %c0_83] : memref<128x128xbf16, #tpu.memory_space<vmem>>, vector<32x128xbf16>
    %c1 = arith.constant 1 : index
    %c0_84 = arith.constant 0 : index
    %352 = vector.load %arg3[%c1, %c0_84] : memref<16x128xf32, #tpu.memory_space<vmem>>, vector<1x128xf32>
    %353 = arith.truncf %350 : vector<8x32xf32> to vector<8x32xbf16>
    %cst_85 = arith.constant dense<0.000000e+00> : vector<8x128xf32>
    %354 = tpu.matmul %353, %351, %cst_85 {dimension_numbers = #tpu.dot_dimension_numbers<[1], [0], [0], [1], [0, 0, 1, 1], [], []>} : vector<8x32xbf16>, vector<32x128xbf16>, vector<8x128xf32> -> vector<8x128xf32>
    %355 = vector.broadcast %352 : vector<1x128xf32> to vector<8x128xf32>
    %356 = arith.addf %354, %355 : vector<8x128xf32>
    %c0_86 = arith.constant 0 : index
    %c0_87 = arith.constant 0 : index
    %357 = vector.load %arg4[%c0_86, %c0_87] : memref<8x128xf32, #tpu.memory_space<vmem>>, vector<8x128xf32>
    tpu.vector_store %arg4[%c0_86, %c0_87], %356 {strides = array<i32>} : memref<8x128xf32, #tpu.memory_space<vmem>>, vector<8x128xf32>,
    return
  }
}

</mosaic_0001>

<bundles_post_ra>
// kernel: blstm_attn_net_forward.1
= control target key start
LH: loop header
LB: loop body
LE: loop exit
PB: predicated region body
PF: predicated region fallthrough
CT: control target
= control target key end

     0   :  { %v1519_v1 = vmov 0.0   ;;  %vm1960_vm0 = vmmov 0   ;;  %vm1962_vm1 = vcmask 261120   ;;  %v1521_v7 = vmov 0   ;;  %s1955_s0 = inlined_call_operand.vmem [shape: bf16[64,32], index: 0, kind: input, shape index: {}]   ;;  %s1956_s1 = inlined_call_operand.vmem [shape: s32[8,1], index: 1, kind: input, shape index: {}]   ;;  %s1957_s2 = inlined_call_operand.vmem [shape: bf16[128,128], index: 2, kind: input, shape index: {}]   ;;  %s1958_s3 = inlined_call_operand.vmem [shape: f32[16,128], index: 3, kind: input, shape index: {}]   ;;  %s1959_s4 = inlined_call_operand.hbm [shape: f32[8,128], index: 4, kind: output, shape index: {}]  }
   0x1   :  { %v1413_v0 = vld [vmem:[%s1957_s2 + $0x8] sm:$0xff]   ;;  %1311 = vmatprep.subr.bf16.mxu1 %v1519_v1  ;;  %v1559_v2 = vld [vmem:[%s1957_s2 + $0x18] sm:$0xff]   ;;  %v1415_v3 = vld [vmem:[%s1957_s2] sm:$0xff]   ;;  %1315 = vmatprep.mubr.msk.bf16.mxu1 %vm1960_vm0, %v1519_v1 }
   0x2   :  { %1299 = vmatprep.subr.bf16.mxu0 %v1413_v0  ;;  %1312 = vmatpush3.bf16.msra.mxu1 %v1559_v2  ;;  %v1570_v4 = vld [vmem:[%s1957_s2 + $0x10] sm:$0xff]   ;;  %v1417_v5 = vld [vmem:[%s1955_s0] sm:$0xff]   ;;  %v1418_v6 = vld [vmem:[%s1955_s0 + $0x8] sm:$0xff]  }
   0x3   :  { %1300 = vmatpush3.bf16.msra.mxu0 %v1413_v0  ;;  %1313 = vmatprep.subr.bf16.mxu1 %v1519_v1 }
   0x4   :  { %1301 = vmatprep.subr.bf16.mxu0 %v1415_v3  ;;  %1412 = vset.pattern.permute.xlu0 %v1521_v7 }
   0x5   :  { %1411 = vset.pattern.permute.xlu1 %v1521_v7  ;;  %1303 = vmatprep.mubr.msk.bf16.mxu0 %vm1962_vm1, %v1417_v5 }
   0x6   :  { %1314 = vmatpush3.bf16.msra.mxu1 %v1570_v4 }
   0x7   :  { %1302 = vmatpush3.bf16.msra.mxu0 %v1415_v3  ;;  %1319 = vmatprep.subr.bf16.mxu1 %v1519_v1 }
   0x8   :  { %1327 = vmatprep.subr.bf16.mxu0 %v1519_v1 }
   0x9   :  { %1316 = vmatmul.mubr.bf16.vlgmr.msra.gmra.mxu1 %v1521_v7 }
   0xa   :  { %1304 = vmatmul.mubr.msk.bf16.vlgmr.msra.gmra.mxu0 %vm1962_vm1, %v1418_v6 }
   0xb   :  { %9 = vsyncpa [#allocation4], 0  ;;  %1320 = vmatpush3.bf16.msra.mxu1 %v1559_v2  ;;  %1323 = vmatprep.mubr.msk.bf16.mxu1 %vm1960_vm0, %v1519_v1  ;;  %v1602_v10 = vld [vmem:[%s1958_s3] ss:$0 sm:$0xff]  ;;  %s1522_s29 = smov 32   ;;  %v159_v33 = vlaneseq  ;;  %s1524_s6 = smov 96  }
   0xc   :  { %1321 = vmatprep.subr.bf16.mxu1 %v1519_v1  ;;  %1328 = vmatpush3.bf16.msra.mxu0 %v1559_v2  ;;  %v1610_v24 = vld [vmem:[%s1956_s1] sm:$0xff]  ;;  %s1523_s1 = smov 64   ;;  %vm1525_vm6 = vmmov 1   ;;  %v1967_v38 = vmov 0  ;;  %v1969_v39 = vmov 0  ;;  %s1526_s21 = smov [#allocation3]  }
   0xd   :  { %1329 = vmatprep.subr.bf16.mxu0 %v1519_v1  ;;  %vm244_vm2 = vcmp.gt.s32.totalorder %v1610_v24, 7  ;;  %vm243_vm3 = vcmp.gt.s32.totalorder %v1610_v24, 0  ;;  %v1619_v34 = vand.u32 127, %v159_v33  ;;  %vm344_vm15 = vcmp.gt.s32.totalorder %v1610_v24, 1  ;;  %s1214_s22 = sshll.u32 %s1526_s21, 4  ;;  %s1215_s22 = int_to_ptr.vmem [resolvable:$true] %s1214_s22 }
   0xe   :  { %v252_v25 = vsel %vm244_vm2, 1, %v1521_v7  ;;  %v245_v30 = vsel %vm243_vm3, 1, %v1521_v7  ;;  %v346_v62 = vsel %vm344_vm15, 1, %v1521_v7  ;;  %vm345_vm2 = vcmp.gt.s32.totalorder %v1610_v24, 6  ;;  %s1497_s23 = scalar_lea.vmem %s1215_s22, 128  ;;  %p1502_p1 = scmp.lt.s32.totalorder %s1215_s22, %s1215_s22 }
   0xf   :  { %1322 = vmatpush3.bf16.msra.mxu1 %v1570_v4  ;;  %vm161_vm4 = vcmp.lt.s32.totalorder %v1619_v34, 16  ;;  %p1498_p0 = scmp.ne.s32.totalorder %s1215_s22, %s1497_s23  ;;  %p1503_p2 = scmp.lt.s32.totalorder %s1497_s23, %s1497_s23 }
  0x10   :  { %1330 = vmatpush3.bf16.msra.mxu0 %v1570_v4  ;;  %1335 = vmatprep.subr.bf16.mxu1 %v1519_v1  ;;  %vm1624_vm7 = vmxor %vm161_vm4, %vm1525_vm6 }
  0x11   :  { %1343 = vmatprep.subr.bf16.mxu0 %v1519_v1  ;;  %p1504_p3 = por %p1503_p2, %p1502_p1 }
  0x13   :  { %p1505_p4 = pnand %p1504_p3, %p1498_p0 }
  0xc9   :  { %v212_v8 = vpop.f32.mrf.mxu1 }
  0xca   :  { %v1597_v9 = vpop.f32.mrf.mxu0 }
  0xcb   :  { %v1317_v11 = vpop.f32.mrf.mxu1 }
  0xcc   :  { %v119_v12 = vpop.f32.mrf.mxu0  ;;  %v1419_v11 = vld [vmem:[%s1955_s0 + $0x10] sm:$0xff]  }
  0xcd   :  { %v120_v13 = vadd.f32 %v1602_v10, %v119_v12  ;;  %v215_v14 = vpop.f32.mrf.mxu1  ;;  %v1420_v12 = vld [vmem:[%s1955_s0 + $0x18] sm:$0xff]   ;;  %1307 = vmatprep.mubr.msk.bf16.mxu0 %vm1962_vm1, %v1419_v11 }
  0xce   :  { %v1674_v47 = vpop.f32.mrf.mxu0  ;;  %1308 = vmatmul.mubr.msk.bf16.gmra.mxu0 %vm1962_vm1, %v1420_v12 }
  0xcf   :  { %v218_v15 = vadd.f32 %v212_v8, %v120_v13  ;;  %v1318_v16 = vpop.f32.mrf.mxu1  ;;  %v352_v8 = vsel %vm345_vm2, 1, %v1521_v7  ;;  %1331 = vmatprep.mubr.msk.bf16.mxu0 %vm1960_vm0, %v1519_v1 }
  0xd0   :  { %v122_v48 = vpop.f32.mrf.mxu0 }
  0xd1   :  { %1425 = vtanh.f32 %v218_v15  ;;  %v1235_v18 = vmul.f32 -1.442695, %v218_v15  ;;  %v123_v49 = vadd.f32 %v1602_v10, %v122_v48 }
  0xd3   :  { %1427 = vpow2.f32 %v1235_v18 }
  0xde   :  { %v1426_v17 = vpop.eup %1425 }
  0xdf   :  { %228 = vrot.lane.b32.xlu0 %v1426_v17, %s1522_s29 }
  0xe0   :  { %v1428_v19 = vpop.eup %1427 }
  0xe1   :  { %v222_v20 = vadd.f32 1.0, %v1428_v19 }
  0xe3   :  { %1429 = vrcp.f32 %v222_v20 }
  0xf0   :  { %v1430_v21 = vpop.eup %1429 }
  0xf1   :  { %v226_v26 = vmul.f32 0.0, %v1430_v21 }
 0x151   :  { %v229_v22 = vpop.permute.xlu0 %228 }
 0x152   :  { %v231_v23 = vmul.f32 %v1430_v21, %v229_v22 }
 0x154   :  { %233 = vrot.lane.b32.xlu0 %v231_v23, %s1522_s29 }
 0x158   :  { %254 = vperm.xlu0 %1412, %v252_v25  }
 0x18e   :  { %v1728_v25 = vpop.f32.mrf.mxu0 }
 0x1c6   :  { %v234_v27 = vpop.permute.xlu0 %233 }
 0x1c7   :  { %v236_v28 = vadd.f32 %v234_v27, %v226_v26  ;;  %v1730_v26 = vpop.f32.mrf.mxu0 }
 0x1c9   :  { %1431 = vtanh.f32 %v236_v28  ;;  %v1732_v27 = vpop.f32.mrf.mxu0 }
 0x1d3   :  { %v255_v35 = vpop.permute.xlu0 %254 }
 0x1d4   :  { %vm256_vm5 = vcmp.eq.s32.totalorder %v255_v35, 1 }
 0x1d5   :  { %vm1630_vm9 = vmand %vm161_vm4, %vm256_vm5 }
 0x1d6   :  { %v1432_v29 = vpop.eup %1431  ;;  %v1968_v38 = vsel %vm1630_vm9, 4294967295, %v1967_v38  ;;  %vm257_vm12 = vmand %vm1624_vm7, %vm256_vm5 }
 0x1d7   :  { %239 = vrot.lane.b32.xlu1 %v1432_v29, %s1522_s29  ;;  %v128_v29 = vadd.f32 %v1597_v9, %v1602_v10 }
 0x1db   :  { %247 = vperm.xlu1 %1411, %v245_v30  }
 0x249   :  { %v240_v31 = vpop.permute.xlu1 %239 }
 0x24a   :  { %v242_v32 = vmul.f32 %v1430_v21, %v240_v31 }
 0x24c   :  { %260 = vrot.lane.b32.xlu1 %v242_v32, %s1523_s1 }
 0x250   :  { %265 = vrot.lane.b32.xlu1 %v236_v28, %s1524_s6  ;;  %v1734_v28 = vpop.f32.mrf.mxu0 }
 0x256   :  { %v248_v36 = vpop.permute.xlu1 %247 }
 0x257   :  { %vm249_vm8 = vcmp.eq.s32.totalorder %v248_v36, 1 }
 0x258   :  { %vm1636_vm10 = vmand %vm1624_vm7, %vm249_vm8 }
 0x259   :  { %v1970_v39 = vsel %vm1636_vm10, 4294967295, %v1969_v39  ;;  %vm250_vm13 = vmand %vm161_vm4, %vm249_vm8 }
 0x25a   :  { %vm1648_vm14 = vmor %vm250_vm13, %vm257_vm12 }
 0x2be   :  { %v1652_v41 = vpop.permute.xlu1 %260 }
 0x2bf   :  { %v1657_v42 = vsel %vm1648_vm14, %v1652_v41, 0.0  ;;  %v269_v43 = vsel %vm1648_vm14, %v1652_v41, -inf }
 0x2c0   :  { %v271_v44 = vpack.c.bf16 %v1657_v42, %v1657_v42 }
 0x2c2   :  { %1324 = vmatmul.mubr.msk.bf16.vlgmr.msra.gmra.mxu1 %vm1962_vm1, %v271_v44  ;;  %v266_v45 = vpop.permute.xlu1 %265 }
 0x2c3   :  { %v268_v46 = vsel %vm1648_vm14, %v266_v45, 0.0  ;;  %1336 = vmatpush3.bf16.msra.mxu1 %v1559_v2  ;;  %1339 = vmatprep.mubr.msk.bf16.mxu1 %vm1960_vm0, %v1519_v1  ;;  %vm1991_vm14 = vnez %v1970_v39 }
 0x2c4   :  { %324 = vrot.lane.b32.xlu1 %v268_v46, %s1522_s29  ;;  %1337 = vmatprep.subr.bf16.mxu1 %v1519_v1 }
 0x2c7   :  { %1338 = vmatpush3.bf16.msra.mxu1 %v1570_v4 }
 0x2c8   :  { %1351 = vmatprep.subr.bf16.mxu1 %v1519_v1 }
 0x336   :  { %v325_v63 = vpop.permute.xlu1 %324 }
 0x382   :  { %v309_v50 = vpop.f32.mrf.mxu1 }
 0x383   :  { %v315_v51 = vadd.f32 %v309_v50, %v123_v49 }
 0x384   :  { %v1325_v52 = vpop.f32.mrf.mxu1 }
 0x385   :  { %1433 = vtanh.f32 %v315_v51  ;;  %v1237_v56 = vmul.f32 -1.442695, %v315_v51 }
 0x386   :  { %v312_v53 = vpop.f32.mrf.mxu1 }
 0x387   :  { %1435 = vpow2.f32 %v1237_v56 }
 0x388   :  { %v1326_v54 = vpop.f32.mrf.mxu1 }
 0x392   :  { %v1434_v55 = vpop.eup %1433 }
 0x393   :  { %329 = vrot.lane.b32.xlu0 %v1434_v55, %s1522_s29 }
 0x394   :  { %v1436_v57 = vpop.eup %1435 }
 0x395   :  { %v319_v58 = vadd.f32 1.0, %v1436_v57 }
 0x397   :  { %1437 = vrcp.f32 %v319_v58 }
 0x3a4   :  { %v1438_v59 = vpop.eup %1437 }
 0x3a5   :  { %v327_v0 = vmul.f32 %v1438_v59, %v325_v63 }
 0x405   :  { %v330_v60 = vpop.permute.xlu0 %329 }
 0x406   :  { %v332_v61 = vmul.f32 %v1438_v59, %v330_v60 }
 0x408   :  { %334 = vrot.lane.b32.xlu0 %v332_v61, %s1522_s29 }
 0x40c   :  { %348 = vperm.xlu0 %1412, %v346_v62   ;;  %v944_v62 = vld [vmem:[%s1958_s3 + $0x8] sm:$0xff] }
 0x47a   :  { %v335_v3 = vpop.permute.xlu0 %334 }
 0x47b   :  { %v337_v5 = vadd.f32 %v335_v3, %v327_v0 }
 0x47d   :  { %1439 = vtanh.f32 %v337_v5 }
 0x487   :  { %v349_v15 = vpop.permute.xlu0 %348 }
 0x488   :  { %vm350_vm3 = vcmp.eq.s32.totalorder %v349_v15, 1 }
 0x489   :  { %vm351_vm5 = vmand %vm161_vm4, %vm350_vm3 }
 0x48a   :  { %v1440_v6 = vpop.eup %1439  ;;  %vm826_vm6 = vmand %vm1624_vm7, %vm350_vm3  ;;  %vm445_vm3 = vcmp.gt.s32.totalorder %v1610_v24, 2 }
 0x48b   :  { %340 = vrot.lane.b32.xlu1 %v1440_v6, %s1522_s29  ;;  %v447_v9 = vsel %vm445_vm3, 1, %v1521_v7  ;;  %v131_v6 = vadd.f32 %v1674_v47, %v1602_v10 }
 0x48f   :  { %354 = vperm.xlu1 %1411, %v352_v8  }
 0x493   :  { %365 = vrot.lane.b32.xlu1 %v337_v5, %s1524_s6 }
 0x4fd   :  { %v341_v13 = vpop.permute.xlu1 %340 }
 0x4fe   :  { %v343_v14 = vmul.f32 %v1438_v59, %v341_v13 }
 0x500   :  { %360 = vrot.lane.b32.xlu0 %v343_v14, %s1523_s1 }
 0x50a   :  { %v355_v16 = vpop.permute.xlu1 %354 }
 0x50b   :  { %vm356_vm8 = vcmp.eq.s32.totalorder %v355_v16, 1 }
 0x50c   :  { %vm357_vm12 = vmand %vm1624_vm7, %vm356_vm8 }
 0x50d   :  { %vm1702_vm13 = vmor %vm351_vm5, %vm357_vm12  ;;  %vm446_vm5 = vcmp.gt.s32.totalorder %v1610_v24, 5 }
 0x50e   :  { %vm825_vm15 = vmand %vm161_vm4, %vm356_vm8  ;;  %v366_v18 = vpop.permute.xlu1 %365  ;;  %v453_v55 = vsel %vm446_vm5, 1, %v1521_v7 }
 0x50f   :  { %vm1708_vm2 = vmor %vm825_vm15, %vm826_vm6  ;;  %v368_v20 = vsel %vm1702_vm13, %v366_v18, %v268_v46 }
 0x510   :  { %425 = vrot.lane.b32.xlu1 %v368_v20, %s1522_s29 }
 0x572   :  { %v1715_v21 = vpop.permute.xlu0 %360 }
 0x573   :  { %v363_v22 = vsel %vm1702_vm13, %v1715_v21, %v1657_v42 }
 0x574   :  { %v372_v23 = vpack.c.bf16 %v363_v22, %v363_v22 }
 0x576   :  { %1332 = vmatmul.mubr.msk.bf16.vlgmr.msra.gmra.mxu0 %vm1962_vm1, %v372_v23 }
 0x577   :  { %1344 = vmatpush3.bf16.msra.mxu0 %v1559_v2  ;;  %1347 = vmatprep.mubr.msk.bf16.mxu0 %vm1960_vm0, %v1519_v1 }
 0x578   :  { %1345 = vmatprep.subr.bf16.mxu0 %v1519_v1 }
 0x57b   :  { %1346 = vmatpush3.bf16.msra.mxu0 %v1570_v4 }
 0x57c   :  { %1359 = vmatprep.subr.bf16.mxu0 %v1519_v1 }
 0x582   :  { %v426_v50 = vpop.permute.xlu1 %425 }
 0x636   :  { %v410_v30 = vpop.f32.mrf.mxu0 }
 0x637   :  { %v416_v31 = vadd.f32 %v410_v30, %v128_v29 }
 0x638   :  { %v1333_v32 = vpop.f32.mrf.mxu0 }
 0x639   :  { %1441 = vtanh.f32 %v416_v31  ;;  %v1239_v42 = vmul.f32 -1.442695, %v416_v31 }
 0x63a   :  { %v413_v33 = vpop.f32.mrf.mxu0 }
 0x63b   :  { %1443 = vpow2.f32 %v1239_v42 }
 0x63c   :  { %v1334_v35 = vpop.f32.mrf.mxu0 }
 0x646   :  { %v1442_v36 = vpop.eup %1441 }
 0x647   :  { %430 = vrot.lane.b32.xlu0 %v1442_v36, %s1522_s29 }
 0x648   :  { %v1444_v44 = vpop.eup %1443 }
 0x649   :  { %v420_v45 = vadd.f32 1.0, %v1444_v44 }
 0x64b   :  { %1445 = vrcp.f32 %v420_v45 }
 0x658   :  { %v1446_v46 = vpop.eup %1445 }
 0x659   :  { %v428_v51 = vmul.f32 %v1446_v46, %v426_v50 }
 0x6b9   :  { %v431_v48 = vpop.permute.xlu0 %430 }
 0x6ba   :  { %v433_v49 = vmul.f32 %v1446_v46, %v431_v48 }
 0x6bc   :  { %435 = vrot.lane.b32.xlu0 %v433_v49, %s1522_s29 }
 0x6c0   :  { %449 = vperm.xlu0 %1412, %v447_v9  }
 0x72e   :  { %v436_v52 = vpop.permute.xlu0 %435 }
 0x72f   :  { %v438_v53 = vadd.f32 %v436_v52, %v428_v51  ;;  %v136_v52 = vadd.f32 %v1602_v10, %v1730_v26 }
 0x731   :  { %1447 = vtanh.f32 %v438_v53 }
 0x73b   :  { %v450_v58 = vpop.permute.xlu0 %449 }
 0x73c   :  { %vm451_vm6 = vcmp.eq.s32.totalorder %v450_v58, 1 }
 0x73d   :  { %vm452_vm8 = vmand %vm161_vm4, %vm451_vm6 }
 0x73e   :  { %v1448_v54 = vpop.eup %1447  ;;  %vm737_vm12 = vmand %vm1624_vm7, %vm451_vm6  ;;  %vm546_vm6 = vcmp.gt.s32.totalorder %v1610_v24, 3 }
 0x73f   :  { %441 = vrot.lane.b32.xlu1 %v1448_v54, %s1522_s29  ;;  %v548_v47 = vsel %vm546_vm6, 1, %v1521_v7 }
 0x743   :  { %455 = vperm.xlu1 %1411, %v453_v55  }
 0x747   :  { %466 = vrot.lane.b32.xlu1 %v438_v53, %s1524_s6 }
 0x7b1   :  { %v442_v56 = vpop.permute.xlu1 %441 }
 0x7b2   :  { %v444_v57 = vmul.f32 %v1446_v46, %v442_v56 }
 0x7b4   :  { %461 = vrot.lane.b32.xlu0 %v444_v57, %s1523_s1 }
 0x7be   :  { %v456_v59 = vpop.permute.xlu1 %455 }
 0x7bf   :  { %vm457_vm15 = vcmp.eq.s32.totalorder %v456_v59, 1 }
 0x7c0   :  { %vm458_vm3 = vmand %vm1624_vm7, %vm457_vm15 }
 0x7c1   :  { %vm1753_vm5 = vmor %vm452_vm8, %vm458_vm3  ;;  %vm547_vm8 = vcmp.gt.s32.totalorder %v1610_v24, 4 }
 0x7c2   :  { %vm736_vm11 = vmand %vm161_vm4, %vm457_vm15  ;;  %v467_v61 = vpop.permute.xlu1 %466  ;;  %v554_v36 = vsel %vm547_vm8, 1, %v1521_v7 }
 0x7c3   :  { %vm1759_vm0 = vmor %vm736_vm11, %vm737_vm12  ;;  %v469_v63 = vsel %vm1753_vm5, %v467_v61, %v368_v20  ;;  %vm1981_vm11 = vmmov 0  }
 0x7c4   :  { %526 = vrot.lane.b32.xlu1 %v469_v63, %s1522_s29 }
 0x826   :  { %v1766_v0 = vpop.permute.xlu0 %461 }
 0x827   :  { %v464_v3 = vsel %vm1753_vm5, %v1766_v0, %v363_v22 }
 0x828   :  { %v473_v5 = vpack.c.bf16 %v464_v3, %v464_v3 }
 0x82a   :  { %1340 = vmatmul.mubr.msk.bf16.vlgmr.msra.gmra.mxu1 %vm1962_vm1, %v473_v5 }
 0x82b   :  { %1352 = vmatpush3.bf16.msra.mxu1 %v1559_v2  ;;  %1355 = vmatprep.mubr.msk.bf16.mxu1 %vm1981_vm11, %v1519_v1 }
 0x82c   :  { %1353 = vmatprep.subr.bf16.mxu1 %v1519_v1 }
 0x82f   :  { %1354 = vmatpush3.bf16.msra.mxu1 %v1570_v4 }
 0x830   :  { %1367 = vmatprep.subr.bf16.mxu1 %v1519_v1 }
 0x836   :  { %v527_v30 = vpop.permute.xlu1 %526 }
 0x8ea   :  { %v511_v8 = vpop.f32.mrf.mxu1 }
 0x8eb   :  { %v517_v11 = vadd.f32 %v511_v8, %v131_v6 }
 0x8ec   :  { %v1341_v12 = vpop.f32.mrf.mxu1 }
 0x8ed   :  { %1449 = vtanh.f32 %v517_v11  ;;  %v1241_v16 = vmul.f32 -1.442695, %v517_v11 }
 0x8ee   :  { %v514_v13 = vpop.f32.mrf.mxu1 }
 0x8ef   :  { %1451 = vpow2.f32 %v1241_v16 }
 0x8f0   :  { %v1342_v14 = vpop.f32.mrf.mxu1 }
 0x8fa   :  { %v1450_v15 = vpop.eup %1449 }
 0x8fb   :  { %531 = vrot.lane.b32.xlu0 %v1450_v15, %s1522_s29 }
 0x8fc   :  { %v1452_v18 = vpop.eup %1451 }
 0x8fd   :  { %v521_v20 = vadd.f32 1.0, %v1452_v18 }
 0x8ff   :  { %1453 = vrcp.f32 %v521_v20 }
 0x90c   :  { %v1454_v22 = vpop.eup %1453 }
 0x90d   :  { %v529_v31 = vmul.f32 %v1454_v22, %v527_v30 }
 0x96d   :  { %v532_v23 = vpop.permute.xlu0 %531 }
 0x96e   :  { %v534_v29 = vmul.f32 %v1454_v22, %v532_v23 }
 0x970   :  { %536 = vrot.lane.b32.xlu0 %v534_v29, %s1522_s29  ;;  %v139_v29 = vadd.f32 %v1602_v10, %v1734_v28 }
 0x974   :  { %550 = vperm.xlu0 %1412, %v548_v47  }
 0x9e2   :  { %v537_v32 = vpop.permute.xlu0 %536 }
 0x9e3   :  { %v539_v33 = vadd.f32 %v537_v32, %v529_v31 }
 0x9e5   :  { %1455 = vtanh.f32 %v539_v33 }
 0x9ef   :  { %v551_v45 = vpop.permute.xlu0 %550 }
 0x9f0   :  { %vm552_vm12 = vcmp.eq.s32.totalorder %v551_v45, 1 }
 0x9f1   :  { %vm553_vm15 = vmand %vm161_vm4, %vm552_vm12 }
 0x9f2   :  { %v1456_v35 = vpop.eup %1455  ;;  %vm648_vm3 = vmand %vm1624_vm7, %vm552_vm12 }
 0x9f3   :  { %542 = vrot.lane.b32.xlu1 %v1456_v35, %s1522_s29 }
 0x9f7   :  { %556 = vperm.xlu1 %1411, %v554_v36  }
 0x9fb   :  { %567 = vrot.lane.b32.xlu1 %v539_v33, %s1524_s6 }
 0xa65   :  { %v543_v42 = vpop.permute.xlu1 %542 }
 0xa66   :  { %v545_v44 = vmul.f32 %v1454_v22, %v543_v42 }
 0xa68   :  { %562 = vrot.lane.b32.xlu0 %v545_v44, %s1523_s1 }
 0xa72   :  { %v557_v46 = vpop.permute.xlu1 %556 }
 0xa73   :  { %vm558_vm6 = vcmp.eq.s32.totalorder %v557_v46, 1 }
 0xa74   :  { %vm559_vm8 = vmand %vm1624_vm7, %vm558_vm6  ;;  %vm1986_vm7 = vcmask 261120  }
 0xa75   :  { %vm1795_vm1 = vmor %vm553_vm15, %vm559_vm8  ;;  %vm923_vm15 = vcmask 7168  }
 0xa76   :  { %vm647_vm10 = vmand %vm161_vm4, %vm558_vm6  ;;  %v568_v48 = vpop.permute.xlu1 %567 }
 0xa77   :  { %vm1801_vm9 = vmor %vm647_vm10, %vm648_vm3  ;;  %v570_v9 = vsel %vm1795_vm1, %v568_v48, %v469_v63 }
 0xa78   :  { %627 = vrot.lane.b32.xlu1 %v570_v9, %s1522_s29  ;;  %vm1987_vm4 = vmmov %vm1986_vm7 }
 0xa79   :  { %vm1988_vm10 = vmmov %vm1987_vm4 }
 0xa7a   :  { %vm1989_vm12 = vmmov %vm1987_vm4 }
 0xada   :  { %v1808_v50 = vpop.permute.xlu0 %562 }
 0xadb   :  { %v565_v37 = vsel %vm1795_vm1, %v1808_v50, %v464_v3 }
 0xadc   :  { %v574_v51 = vpack.c.bf16 %v565_v37, %v565_v37 }
 0xade   :  { %1348 = vmatmul.mubr.msk.bf16.vlgmr.msra.gmra.mxu0 %vm1986_vm7, %v574_v51 }
 0xadf   :  { %1360 = vmatpush3.bf16.msra.mxu0 %v1559_v2  ;;  %1363 = vmatprep.mubr.msk.bf16.mxu0 %vm1981_vm11, %v1519_v1 }
 0xae0   :  { %1361 = vmatprep.subr.bf16.mxu0 %v1519_v1 }
 0xae3   :  { %1362 = vmatpush3.bf16.msra.mxu0 %v1570_v4 }
 0xae4   :  { %1375 = vmatprep.subr.bf16.mxu0 %v1519_v1 }
 0xaea   :  { %v628_v26 = vpop.permute.xlu1 %627 }
 0xb9e   :  { %v612_v53 = vpop.f32.mrf.mxu0 }
 0xb9f   :  { %v618_v54 = vadd.f32 %v612_v53, %v136_v52 }
 0xba0   :  { %v1349_v55 = vpop.f32.mrf.mxu0 }
 0xba1   :  { %1457 = vtanh.f32 %v618_v54  ;;  %v1243_v59 = vmul.f32 -1.442695, %v618_v54 }
 0xba2   :  { %v615_v56 = vpop.f32.mrf.mxu0 }
 0xba3   :  { %1459 = vpow2.f32 %v1243_v59 }
 0xba4   :  { %v1350_v57 = vpop.f32.mrf.mxu0 }
 0xbae   :  { %v1458_v58 = vpop.eup %1457 }
 0xbaf   :  { %632 = vrot.lane.b32.xlu0 %v1458_v58, %s1522_s29  ;;  %v144_v58 = vadd.f32 %v1728_v25, %v1602_v10 }
 0xbb0   :  { %v1460_v61 = vpop.eup %1459 }
 0xbb1   :  { %v622_v63 = vadd.f32 1.0, %v1460_v61 }
 0xbb3   :  { %1461 = vrcp.f32 %v622_v63 }
 0xbc0   :  { %v1462_v3 = vpop.eup %1461 }
 0xbc1   :  { %v630_v8 = vmul.f32 %v1462_v3, %v628_v26 }
 0xc21   :  { %v633_v5 = vpop.permute.xlu0 %632 }
 0xc22   :  { %v635_v6 = vmul.f32 %v1462_v3, %v633_v5 }
 0xc24   :  { %637 = vrot.lane.b32.xlu0 %v635_v6, %s1522_s29 }
 0xc96   :  { %v638_v11 = vpop.permute.xlu0 %637 }
 0xc97   :  { %v640_v12 = vadd.f32 %v638_v11, %v630_v8 }
 0xc99   :  { %1463 = vtanh.f32 %v640_v12 }
 0xca6   :  { %v1464_v13 = vpop.eup %1463 }
 0xca7   :  { %643 = vrot.lane.b32.xlu1 %v1464_v13, %s1522_s29 }
 0xcab   :  { %656 = vrot.lane.b32.xlu1 %v640_v12, %s1524_s6 }
 0xd19   :  { %v644_v14 = vpop.permute.xlu1 %643 }
 0xd1a   :  { %v646_v15 = vmul.f32 %v1462_v3, %v644_v14 }
 0xd1c   :  { %651 = vrot.lane.b32.xlu0 %v646_v15, %s1523_s1 }
 0xd1d   :  { %v657_v16 = vpop.permute.xlu1 %656 }
 0xd1e   :  { %v659_v18 = vsel %vm1801_vm9, %v657_v16, %v570_v9 }
 0xd1f   :  { %716 = vrot.lane.b32.xlu1 %v659_v18, %s1522_s29 }
 0xd8e   :  { %v1830_v20 = vpop.permute.xlu0 %651 }
 0xd8f   :  { %v654_v22 = vsel %vm1801_vm9, %v1830_v20, %v565_v37 }
 0xd90   :  { %v663_v23 = vpack.c.bf16 %v654_v22, %v654_v22 }
 0xd91   :  { %v717_v28 = vpop.permute.xlu1 %716 }
 0xd92   :  { %1356 = vmatmul.mubr.msk.bf16.vlgmr.msra.gmra.mxu1 %vm1987_vm4, %v663_v23 }
 0xd93   :  { %1368 = vmatpush3.bf16.msra.mxu1 %v1559_v2  ;;  %1371 = vmatprep.mubr.msk.bf16.mxu1 %vm1981_vm11, %v1519_v1 }
 0xd94   :  { %1369 = vmatprep.subr.bf16.mxu1 %v1519_v1 }
 0xd97   :  { %1370 = vmatpush3.bf16.msra.mxu1 %v1570_v4 }
 0xd98   :  { %1383 = vmatprep.subr.bf16.mxu1 %v1519_v1 }
 0xe52   :  { %v701_v47 = vpop.f32.mrf.mxu1 }
 0xe53   :  { %v707_v30 = vadd.f32 %v701_v47, %v139_v29 }
 0xe54   :  { %v1357_v31 = vpop.f32.mrf.mxu1 }
 0xe55   :  { %1465 = vtanh.f32 %v707_v30  ;;  %v1245_v2 = vmul.f32 -1.442695, %v707_v30 }
 0xe56   :  { %v704_v32 = vpop.f32.mrf.mxu1 }
 0xe57   :  { %1467 = vpow2.f32 %v1245_v2 }
 0xe58   :  { %v1358_v33 = vpop.f32.mrf.mxu1 }
 0xe62   :  { %v1466_v35 = vpop.eup %1465 }
 0xe63   :  { %721 = vrot.lane.b32.xlu0 %v1466_v35, %s1522_s29  ;;  %v147_v35 = vadd.f32 %v1732_v27, %v1602_v10 }
 0xe64   :  { %v1468_v36 = vpop.eup %1467 }
 0xe65   :  { %v711_v42 = vadd.f32 1.0, %v1468_v36 }
 0xe67   :  { %1469 = vrcp.f32 %v711_v42 }
 0xe74   :  { %v1470_v4 = vpop.eup %1469 }
 0xe75   :  { %v719_v46 = vmul.f32 %v1470_v4, %v717_v28  ;;  %v924_v28 = vsel %vm923_vm15, %v1610_v24, 2147483648 }
 0xed5   :  { %v722_v44 = vpop.permute.xlu0 %721 }
 0xed6   :  { %v724_v45 = vmul.f32 %v1470_v4, %v722_v44 }
 0xed8   :  { %726 = vrot.lane.b32.xlu0 %v724_v45, %s1522_s29 }
 0xf4a   :  { %v727_v48 = vpop.permute.xlu0 %726 }
 0xf4b   :  { %v729_v9 = vadd.f32 %v727_v48, %v719_v46  ;;  %v925_v48 = vrot.slane %v924_v28, 4 }
 0xf4d   :  { %1471 = vtanh.f32 %v729_v9  ;;  %vm926_vm3 = vcmp.gt.s32.totalorder %v924_v28, %v925_v48 }
 0xf5a   :  { %v1472_v37 = vpop.eup %1471 }
 0xf5b   :  { %732 = vrot.lane.b32.xlu1 %v1472_v37, %s1522_s29 }
 0xf5f   :  { %745 = vrot.lane.b32.xlu1 %v729_v9, %s1524_s6  ;;  %v927_v9 = vsel %vm926_vm3, %v924_v28, %v925_v48 }
 0xf60   :  { %v928_v37 = vrot.slane %v927_v9, 2 }
 0xf62   :  { %vm929_vm6 = vcmp.gt.s32.totalorder %v927_v9, %v928_v37 }
 0xf63   :  { %v930_v27 = vsel %vm929_vm6, %v927_v9, %v928_v37 }
 0xfcd   :  { %v733_v51 = vpop.permute.xlu1 %732 }
 0xfce   :  { %v735_v52 = vmul.f32 %v1470_v4, %v733_v51 }
 0xfd0   :  { %740 = vrot.lane.b32.xlu0 %v735_v52, %s1523_s1  ;;  %v931_v52 = vrot.slane %v930_v27, 1 }
 0xfd1   :  { %v746_v53 = vpop.permute.xlu1 %745 }
 0xfd2   :  { %v748_v54 = vsel %vm1759_vm0, %v746_v53, %v659_v18  ;;  %vm932_vm8 = vcmp.gt.s32.totalorder %v930_v27, %v931_v52 }
 0xfd3   :  { %805 = vrot.lane.b32.xlu1 %v748_v54, %s1522_s29  ;;  %v933_v53 = vsel %vm932_vm8, %v930_v27, %v931_v52 }
 0xfd4   :  { %vm934_vm7 = vcmp.gt.s32.totalorder %v933_v53, 1 }
0x1042   :  { %v1852_v55 = vpop.permute.xlu0 %740 }
0x1043   :  { %v743_v56 = vsel %vm1759_vm0, %v1852_v55, %v654_v22 }
0x1044   :  { %v752_v57 = vpack.c.bf16 %v743_v56, %v743_v56 }
0x1045   :  { %v806_v25 = vpop.permute.xlu1 %805 }
0x1046   :  { %1364 = vmatmul.mubr.msk.bf16.vlgmr.msra.gmra.mxu0 %vm1988_vm10, %v752_v57 }
0x1047   :  { %1379 = vmatprep.mubr.msk.bf16.mxu0 %vm1981_vm11, %v1519_v1 }
0x1106   :  { %v790_v59 = vpop.f32.mrf.mxu0 }
0x1107   :  { %v796_v61 = vadd.f32 %v790_v59, %v144_v58 }
0x1108   :  { %v1365_v63 = vpop.f32.mrf.mxu0 }
0x1109   :  { %1473 = vtanh.f32 %v796_v61  ;;  %v1247_v26 = vmul.f32 -1.442695, %v796_v61 }
0x110a   :  { %v793_v3 = vpop.f32.mrf.mxu0 }
0x110b   :  { %1475 = vpow2.f32 %v1247_v26  ;;  %v1421_v26 = vld [vmem:[%s1957_s2 + $0x28] sm:$0xff]  }
0x110c   :  { %v1366_v5 = vpop.f32.mrf.mxu0  ;;  %1376 = vmatpush3.bf16.msra.mxu0 %v1421_v26 }
0x110d   :  { %1377 = vmatprep.subr.bf16.mxu0 %v1519_v1 }
0x1116   :  { %v1474_v6 = vpop.eup %1473 }
0x1117   :  { %810 = vrot.lane.b32.xlu0 %v1474_v6, %s1522_s29 }
0x1118   :  { %v1476_v8 = vpop.eup %1475 }
0x1119   :  { %v800_v11 = vadd.f32 1.0, %v1476_v8 }
0x111b   :  { %1477 = vrcp.f32 %v800_v11 }
0x1128   :  { %v1478_v12 = vpop.eup %1477 }
0x1129   :  { %v808_v15 = vmul.f32 %v1478_v12, %v806_v25  ;;  %v571_v25 = vsel %vm1795_vm1, %v1808_v50, -inf  ;;  %vm1990_vm1 = vnez %v1968_v38 }
0x1189   :  { %v811_v13 = vpop.permute.xlu0 %810 }
0x118a   :  { %v813_v14 = vmul.f32 %v1478_v12, %v811_v13  ;;  %v470_v13 = vsel %vm1753_vm5, %v1766_v0, -inf  ;;  %vm1057_vm5 = vcmp.ge.s32.totalorder %v1619_v34, 5 }
0x118c   :  { %815 = vrot.lane.b32.xlu0 %v813_v14, %s1522_s29 }
0x11fe   :  { %v816_v16 = vpop.permute.xlu0 %815 }
0x11ff   :  { %v818_v18 = vadd.f32 %v816_v16, %v808_v15  ;;  %v660_v16 = vsel %vm1801_vm9, %v1830_v20, -inf }
0x1201   :  { %1479 = vtanh.f32 %v818_v18 }
0x120e   :  { %v1480_v22 = vpop.eup %1479 }
0x120f   :  { %821 = vrot.lane.b32.xlu1 %v1480_v22, %s1522_s29 }
0x1213   :  { %834 = vrot.lane.b32.xlu1 %v818_v18, %s1524_s6 }
0x1281   :  { %v822_v23 = vpop.permute.xlu1 %821 }
0x1282   :  { %v824_v29 = vmul.f32 %v1478_v12, %v822_v23  ;;  %v369_v12 = vsel %vm1702_vm13, %v1715_v21, -inf  ;;  %v749_v21 = vsel %vm1759_vm0, %v1852_v55, -inf  ;;  %vm1992_vm13 = vmor %vm1990_vm1, %vm1991_vm14 }
0x1283   :  { %v370_v14 = vmax.f32 %v269_v43, %v369_v12  ;;  %vm1993_vm0 = vmmov %vm1988_vm10  ;;  %vm1059_vm10 = vcmask 64512  }
0x1284   :  { %829 = vrot.lane.b32.xlu0 %v824_v29, %s1523_s1  ;;  %vm1994_vm9 = vmmov %vm1993_vm0 }
0x1285   :  { %v835_v47 = vpop.permute.xlu1 %834  ;;  %v471_v15 = vmax.f32 %v370_v14, %v470_v13  ;;  %vm1997_vm15 = vmmov %vm1993_vm0 }
0x1286   :  { %v837_v30 = vsel %vm1708_vm2, %v835_v47, %v748_v54  ;;  %v935_v54 = vsel %vm934_vm7, %v933_v53, 1  ;;  %vm1998_vm8 = vmmov %vm1993_vm0 }
0x1287   :  { %894 = vrot.lane.b32.xlu1 %v837_v30, %s1522_s29  ;;  %vm936_vm4 = vcmp.ge.s32.totalorder %v1610_v24, %v935_v54  ;;  %v1422_v24 = vld [vmem:[%s1957_s2 + $0x20] sm:$0xff]   ;;  %v572_v17 = vmax.f32 %v471_v15, %v571_v25 }
0x1288   :  { %v937_v59 = vsel %vm936_vm4, -inf, %v1519_v1  ;;  %1378 = vmatpush3.bf16.msra.mxu0 %v1422_v24 }
0x1289   :  { %1389 = vmatprep.subr.bf16.mxu0 %v1519_v1  ;;  %v661_v60 = vmax.f32 %v572_v17, %v660_v16 }
0x128b   :  { %v750_v41 = vmax.f32 %v661_v60, %v749_v21 }
0x12f6   :  { %v1870_v31 = vpop.permute.xlu0 %829 }
0x12f7   :  { %v832_v32 = vsel %vm1708_vm2, %v1870_v31, %v743_v56  ;;  %v838_v40 = vsel %vm1708_vm2, %v1870_v31, -inf  ;;  %vm1995_vm2 = vmmov %vm1993_vm0 }
0x12f8   :  { %v841_v33 = vpack.c.bf16 %v832_v32, %v832_v32  ;;  %v839_v43 = vmax.f32 %v750_v41, %v838_v40 }
0x12f9   :  { %v895_v61 = vpop.permute.xlu1 %894 }
0x12fa   :  { %1372 = vmatmul.mubr.msk.bf16.vlgmr.msra.gmra.mxu1 %vm1989_vm12, %v841_v33  ;;  %vm1996_vm12 = vmmov %vm1993_vm0 }
0x12fb   :  { %1385 = vmatprep.mubr.msk.bf16.mxu1 %vm1981_vm11, %v1519_v1 }
0x13ba   :  { %v879_v2 = vpop.f32.mrf.mxu1 }
0x13bb   :  { %v885_v36 = vadd.f32 %v879_v2, %v147_v35 }
0x13bc   :  { %v1373_v42 = vpop.f32.mrf.mxu1 }
0x13bd   :  { %1481 = vtanh.f32 %v885_v36  ;;  %v1249_v46 = vmul.f32 -1.442695, %v885_v36 }
0x13be   :  { %v882_v4 = vpop.f32.mrf.mxu1 }
0x13bf   :  { %1483 = vpow2.f32 %v1249_v46 }
0x13c0   :  { %v1374_v44 = vpop.f32.mrf.mxu1 }
0x13ca   :  { %v1482_v45 = vpop.eup %1481 }
0x13cb   :  { %899 = vrot.lane.b32.xlu0 %v1482_v45, %s1522_s29 }
0x13cc   :  { %v1484_v10 = vpop.eup %1483 }
0x13cd   :  { %v889_v51 = vadd.f32 1.0, %v1484_v10 }
0x13cf   :  { %1485 = vrcp.f32 %v889_v51 }
0x13dc   :  { %v1486_v56 = vpop.eup %1485 }
0x13dd   :  { %v897_v63 = vmul.f32 %v1486_v56, %v895_v61 }
0x143d   :  { %v900_v57 = vpop.permute.xlu0 %899 }
0x143e   :  { %v902_v58 = vmul.f32 %v1486_v56, %v900_v57 }
0x1440   :  { %904 = vrot.lane.b32.xlu0 %v902_v58, %s1522_s29 }
0x1444   :  { %940 = vperm.xlu0 %1412, %v937_v59  }
0x14b2   :  { %v905_v3 = vpop.permute.xlu0 %904 }
0x14b3   :  { %v907_v5 = vadd.f32 %v905_v3, %v897_v63  ;;  %v1423_v3 = vld [vmem:[%s1957_s2 + $0x38] sm:$0xff]  }
0x14b5   :  { %1487 = vtanh.f32 %v907_v5  ;;  %v1424_v5 = vld [vmem:[%s1957_s2 + $0x30] sm:$0xff]  }
0x14bf   :  { %v941_v50 = vpop.permute.xlu0 %940 }
0x14c2   :  { %v1488_v6 = vpop.eup %1487 }
0x14c3   :  { %910 = vrot.lane.b32.xlu1 %v1488_v6, %s1522_s29 }
0x1535   :  { %v911_v8 = vpop.permute.xlu1 %910 }
0x1536   :  { %v913_v11 = vmul.f32 %v1486_v56, %v911_v8 }
0x1538   :  { %918 = vrot.lane.b32.xlu1 %v913_v11, %s1523_s1 }
0x15aa   :  { %v919_v0 = vpop.permute.xlu1 %918 }
0x15ab   :  { %v921_v7 = vsel %vm1992_vm13, %v919_v0, -inf }
0x15ac   :  { %v922_v49 = vmax.f32 %v839_v43, %v921_v7 }
0x15ae   :  { %v943_v20 = vmax.f32 %v922_v49, %v941_v50 }
0x15b0   :  { %v945_v55 = vadd.f32 %v944_v62, %v943_v20 }
0x15b2   :  { %v946_v18 = vpack.c.bf16 %v945_v55, %v945_v55 }
0x15b4   :  { %1380 = vmatmul.mubr.msk.bf16.vlgmr.msra.gmra.mxu0 %vm1993_vm0, %v946_v18 }
0x15b5   :  { %1391 = vmatprep.mubr.msk.bf16.mxu0 %vm1981_vm11, %v1519_v1 }
0x1674   :  { %v1000_v19 = vpop.f32.mrf.mxu0 }
0x1675   :  { %v1006_v38 = vpack.c.bf16 %v1000_v19, %v1000_v19 }
0x1676   :  { %v1381_v22 = vpop.f32.mrf.mxu0 }
0x1677   :  { %1008 = vrot.lane.b32.xlu0 %v1006_v38, %s1524_s6 }
0x1678   :  { %v1003_v39 = vpop.f32.mrf.mxu0 }
0x167a   :  { %v1382_v23 = vpop.f32.mrf.mxu0 }
0x16e9   :  { %v1009_v29 = vpop.permute.xlu0 %1008 }
0x16ea   :  { %v1014_v47 = vsel %vm1994_vm9, %v1009_v29, 0 }
0x16eb   :  { %1384 = vmatpush3.bf16.xpose.msra.mxu1 %v1014_v47 }
0x16ec   :  { %1395 = vmatprep.subr.bf16.mxu1 %v1519_v1 }
0x16f2   :  { %1386 = vmatmul.mubr.msk.bf16.vlgmr.msra.gmra.mxu1 %vm1995_vm2, %v1006_v38 }
0x16f3   :  { %1399 = vmatprep.mubr.msk.bf16.mxu1 %vm1981_vm11, %v1519_v1  ;;  %vm1077_vm11 = vcmask 1043456   ;;  %1396 = vmatpush3.bf16.msra.mxu1 %v1423_v3 }
0x16f4   :  { %1397 = vmatprep.subr.bf16.mxu1 %v1519_v1  ;;  %v1255_v1 = vld [vmem:[%s1958_s3 + $0x1] ss:$0 sm:$0xff] }
0x16f7   :  { %1398 = vmatpush3.bf16.msra.mxu1 %v1424_v5 }
0x17b2   :  { %v1050_v30 = vpop.f32.mrf.mxu1 }
0x17b3   :  { %v1056_v31 = vmul.f32 0.17677669, %v1050_v30 }
0x17b4   :  { %v1387_v32 = vpop.f32.mrf.mxu1 }
0x17b5   :  { %v1058_v33 = vsel %vm1057_vm5, -1e+10, %v1056_v31 }
0x17b6   :  { %v1053_v35 = vpop.f32.mrf.mxu1  ;;  %v1060_v2 = vsel %vm1059_vm10, %v1058_v33, -inf }
0x17b7   :  { %1061 = vmax.xlane.f32.xlu1 %v1060_v2 }
0x17b8   :  { %v1388_v36 = vpop.f32.mrf.mxu1 }
0x1840   :  { %v1062_v42 = vpop.xlane.xlu1 %1061 }
0x1841   :  { %v1063_v4 = vsub.f32 %v1058_v33, %v1062_v42 }
0x1843   :  { %v1064_v44 = vmul.f32 1.442695, %v1063_v4 }
0x1845   :  { %1489 = vpow2.f32 %v1064_v44 }
0x1852   :  { %v1490_v45 = vpop.eup %1489 }
0x1853   :  { %v1066_v28 = vsel %vm1059_vm10, %v1490_v45, 0.0 }
0x1854   :  { %1067 = vadd.xlane.f32.xlu0 %v1066_v28 }
0x186a   :  { %1072 = vrot.lane.b32.xlu0 %v1006_v38, %s1523_s1 }
0x18dd   :  { %v1068_v34 = vpop.xlane.xlu0 %1067 }
0x18de   :  { %1491 = vrcp.f32 %v1068_v34 }
0x18e1   :  { %v1073_v46 = vpop.permute.xlu0 %1072 }
0x18e2   :  { %v1079_v48 = vsel %vm1077_vm11, %v1073_v46, 0 }
0x18e3   :  { %1390 = vmatpush3.bf16.msra.mxu0 %v1079_v48 }
0x18eb   :  { %v1492_v9 = vpop.eup %1491 }
0x18ec   :  { %v1070_v37 = vmul.f32 %v1492_v9, %v1490_v45 }
0x18ee   :  { %v1071_v10 = vpack.c.bf16 %v1070_v37, %v1070_v37 }
0x18f0   :  { %1392 = vmatmul.mubr.msk.bf16.vlgmr.msra.gmra.mxu0 %vm1059_vm10, %v1071_v10 }
0x19b0   :  { %v1115_v27 = vpop.f32.mrf.mxu0 }
0x19b1   :  { %v1116_v51 = vadd.f32 %v1115_v27, %v945_v55 }
0x19b2   :  { %v1393_v52 = vpop.f32.mrf.mxu0 }
0x19b3   :  { %v1121_v53 = vsel %vm1996_vm12, %v1116_v51, 0.0 }
0x19b4   :  { %1122 = vadd.xlane.f32.xlu1 %v1121_v53  ;;  %v1118_v54 = vpop.f32.mrf.mxu0 }
0x19b6   :  { %v1394_v56 = vpop.f32.mrf.mxu0 }
0x1a3d   :  { %v1123_v57 = vpop.xlane.xlu1 %1122 }
0x1a3e   :  { %v1125_v58 = vmul.f32 0.03125, %v1123_v57 }
0x1a40   :  { %v1126_v59 = vsub.f32 %v1116_v51, %v1125_v58 }
0x1a42   :  { %v1127_v61 = vmul.f32 %v1126_v59, %v1126_v59 }
0x1a44   :  { %v1128_v63 = vsel %vm1997_vm15, %v1127_v61, 0.0 }
0x1a45   :  { %1129 = vadd.xlane.f32.xlu1 %v1128_v63 }
0x1ace   :  { %v1130_v6 = vpop.xlane.xlu1 %1129 }
0x1acf   :  { %v1131_v26 = vmul.f32 0.032258064, %v1130_v6 }
0x1ad1   :  { %1493 = vrsqrt.f32 %v1131_v26  ;;  %vm1134_vm3 = vcmp.eq.f32.partialorder %v1131_v26, inf  ;;  %v1137_v11 = vand.u32 2147483648, %v1131_v26  ;;  %vm1136_vm6 = vcmp.eq.f32.partialorder %v1131_v26, 0.0 }
0x1ade   :  { %v1494_v24 = vpop.eup %1493 }
0x1adf   :  { %v1133_v8 = vmul.f32 %v1494_v24, %v1131_v26 }
0x1ae1   :  { %v1135_v12 = vsel %vm1134_vm3, %v1131_v26, %v1133_v8 }
0x1ae2   :  { %v1138_v13 = vsel %vm1136_vm6, %v1137_v11, %v1135_v12 }
0x1ae3   :  { %v1139_v14 = vadd.f32 1e-06, %v1138_v13 }
0x1ae5   :  { %1495 = vrcp.f32 %v1139_v14 }
0x1af2   :  { %v1496_v25 = vpop.eup %1495 }
0x1af3   :  { %v1141_v15 = vmul.f32 %v1496_v25, %v1126_v59 }
0x1af5   :  { %v1147_v16 = vpack.c.bf16 %v1141_v15, %v1141_v15 }
0x1af7   :  { %1400 = vmatmul.mubr.msk.bf16.vlgmr.msra.gmra.mxu1 %vm1998_vm8, %v1147_v16 }
0x1bb7   :  { %v1201_v17 = vpop.f32.mrf.mxu1 }
0x1bb8   :  { %v1202_v21 = vadd.f32 %v1255_v1, %v1201_v17 }
0x1bb9   :  { %v1401_v60 = vpop.f32.mrf.mxu1 }
0x1bba   :  { %1207 = vst [vmem:[#allocation3] sm:$0xff] %v1202_v21 }
0x1bbb   :  { %v1204_v40 = vpop.f32.mrf.mxu1 }
0x1bbc   :  { %1508 = shalt.err (!%p1505_p4)
}
0x1bbd   :  { %1217 = dma.vmem_to_hbm [thread:$0]  %s1215_s22, 128, %s1959_s4, [#allocation4]   ;;  %v1402_v41 = vpop.f32.mrf.mxu1 }
0x1bbe   :  { %1517 = dma.done.wait [#allocation4], 128  }
0x1bbf   :  { %1518 = vsyncadd [#allocation4], 4294967168 }
0x1bc0   :  { %1221 = vsyncpa [#allocation4], 1 }

</bundles_post_ra>
